<compile_context>
chip_gen: v7x
topology: tpu7x:2x2x1
jax: 0.10.0
libtpu: 0.0.40
codegen_flags: <defaults>
</compile_context>

<pallas_src>
import jax
import jax.numpy as jnp
from jax import lax
from jax.experimental import pallas as pl
from jax.experimental.pallas import tpu as pltpu

LANES = 128  # padded lane width for the FC head (== 4*H for H=32)


def _row_offsets(d_in, hidden, lanes):
    """Static row layout of the packed (rows, lanes) weight buffer (8-row aligned)."""
    r_wih = 0                    # rows [0, 8):   W_ih (d_in used rows, rest zero)
    r_bias = 8                   # row 8: b_ih+b_hh, row 9: b1 (padded), row 10: b2 (padded)
    r_whh = 16                   # rows [16, 16+H)
    r_w1 = 16 + hidden           # rows [.., ..+H)     w1 zero-padded to `lanes` cols
    r_w2 = 16 + 2 * hidden       # rows [.., ..+lanes) w2 zero-padded rows & cols
    rows = r_w2 + lanes
    return r_wih, r_bias, r_whh, r_w1, r_w2, rows


def _make_kernel(B, T, D, H, lanes):
    H4 = 4 * H
    R_WIH, R_BIAS, R_WHH, R_W1, R_W2, _ = _row_offsets(D, H, lanes)

    def kernel(x_ref, w_ref, out_ref):
        # ---- unpack the single packed weight buffer with static (zero-cost) slices ----
        wih = w_ref[R_WIH:R_WIH + D, :]            # (D, 4H)
        b_l = w_ref[R_BIAS + 0:R_BIAS + 1, :]      # (1, 4H)   b_ih + b_hh
        b1 = w_ref[R_BIAS + 1:R_BIAS + 2, :]       # (1, lanes) padded
        b2 = w_ref[R_BIAS + 2:R_BIAS + 3, :]       # (1, lanes) padded
        whh = w_ref[R_WHH:R_WHH + H, :]            # (H, 4H)
        w1 = w_ref[R_W1:R_W1 + H, :]               # (H, lanes) padded cols
        w2 = w_ref[R_W2:R_W2 + lanes, :]           # (lanes, lanes) padded rows/cols

        # ---- fused input projection: one (B*T, D) @ (D, 4H) MXU dot in-kernel ----
        xw = jnp.dot(x_ref[...], wih, preferred_element_type=jnp.float32) + b_l
        xw = xw.reshape(B, T, H4)                  # time slices are static sublane picks

        # ---- serial LSTM recurrence, h/c carried in registers, fully unrolled ----
        h = jnp.zeros((B, H), jnp.float32)
        c = jnp.zeros((B, H), jnp.float32)
        for t in range(T):
            gates = xw[:, t, :] + jnp.dot(h, whh, preferred_element_type=jnp.float32)
            s = jax.nn.sigmoid(gates)              # one full-width EUP pass over (B, 4H)
            i = s[:, 0 * H:1 * H]
            f = s[:, 1 * H:2 * H]
            o = s[:, 3 * H:4 * H]
            g = jnp.tanh(gates[:, 2 * H:3 * H])    # tanh only on the g quadrant
            c = f * c + i * g
            h = o * jnp.tanh(c)

        # ---- FC head, lane-dense: Linear -> ReLU -> Dropout(id, eval) -> Linear -> ReLU ----
        z1 = jnp.maximum(jnp.dot(h, w1, preferred_element_type=jnp.float32) + b1, 0.0)
        z2 = jnp.dot(z1, w2, preferred_element_type=jnp.float32) + b2
        out_ref[...] = jnp.maximum(z2, 0.0)        # outer self.actv; padded lanes stay 0

    return kernel


def pack_params(params, lanes=LANES):
    """Pack all weights into one (rows, lanes) f32 buffer (one DMA into the kernel)."""
    wih, b, whh = params["wih"], params["b"], params["whh"]
    w1, b1, w2, b2 = params["w1"], params["b1"], params["w2"], params["b2"]
    D, H4 = wih.shape
    H = whh.shape[0]
    half, out = w2.shape
    assert H4 == lanes and half <= lanes and out <= lanes, "pack layout assumes 4*H == lanes"
    _, r_bias, r_whh, r_w1, r_w2, rows = _row_offsets(D, H, lanes)
    buf = jnp.zeros((rows, lanes), jnp.float32)
    buf = buf.at[0:D, :].set(wih)
    buf = buf.at[r_bias + 0:r_bias + 1, :].set(b)
    buf = buf.at[r_bias + 1:r_bias + 2, :half].set(b1)
    buf = buf.at[r_bias + 2:r_bias + 3, :out].set(b2)
    buf = buf.at[r_whh:r_whh + H, :].set(whh)
    buf = buf.at[r_w1:r_w1 + H, :half].set(w1)
    buf = buf.at[r_w2:r_w2 + half, :out].set(w2)
    return buf


def base_model_forward(x, packed, *, hidden=32, output_size=21, lanes=LANES):
    """x: (B, T, D_in) float32 batch-first (like PyTorch). Returns (B, output_size)."""
    B, T, D = x.shape
    x_flat = x.reshape(B * T, D)   # row-major contiguous -> free bitcast, no extra copy

    vmem = pl.BlockSpec(memory_space=pltpu.MemorySpace.VMEM)
    out_padded = pl.pallas_call(
        _make_kernel(B, T, D, hidden, lanes),
        out_shape=jax.ShapeDtypeStruct((B, lanes), jnp.float32),
        in_specs=[vmem, vmem],
        out_specs=vmem,
    )(x_flat, packed)
    # torch .squeeze(1) is a no-op for output_size > 1.
    return out_padded[:, :output_size]


def init_params(key, input_size, hidden_size, output_size):
    """Deterministic PyTorch-style uniform(-1/sqrt(fan), 1/sqrt(fan)) init."""
    ks = jax.random.split(key, 8)
    kH = 1.0 / jnp.sqrt(hidden_size)
    kF = 1.0 / jnp.sqrt(hidden_size // 2)
    u = lambda k, shape, bound: jax.random.uniform(k, shape, jnp.float32, -bound, bound)
    # LSTM weights stored transposed: (in, 4H); combined bias b_ih + b_hh as (1, 4H).
    wih = u(ks[0], (input_size, 4 * hidden_size), kH)
    whh = u(ks[1], (hidden_size, 4 * hidden_size), kH)
    b = (u(ks[2], (1, 4 * hidden_size), kH) + u(ks[3], (1, 4 * hidden_size), kH))
    w1 = u(ks[4], (hidden_size, hidden_size // 2), kH)
    b1 = u(ks[5], (1, hidden_size // 2), kH)
    w2 = u(ks[6], (hidden_size // 2, output_size), kF)
    b2 = u(ks[7], (1, output_size), kF)
    return dict(wih=wih, whh=whh, b=b, w1=w1, b1=b1, w2=w2, b2=b2)


def reference_forward(x, params):
    """Pure-JAX reference of the same math (correctness sanity check)."""
    B, T, D = x.shape
    H = params["whh"].shape[0]
    h = jnp.zeros((B, H), jnp.float32)
    c = jnp.zeros((B, H), jnp.float32)

    def step(carry, x_t):
        h, c = carry
        gates = x_t @ params["wih"] + h @ params["whh"] + params["b"]
        i = jax.nn.sigmoid(gates[:, 0 * H:1 * H])
        f = jax.nn.sigmoid(gates[:, 1 * H:2 * H])
        g = jnp.tanh(gates[:, 2 * H:3 * H])
        o = jax.nn.sigmoid(gates[:, 3 * H:4 * H])
        c = f * c + i * g
        h = o * jnp.tanh(c)
        return (h, c), None

    (h, c), _ = lax.scan(step, (h, c), jnp.transpose(x, (1, 0, 2)))
    z1 = jnp.maximum(h @ params["w1"] + params["b1"], 0.0)
    z2 = z1 @ params["w2"] + params["b2"]
    return jnp.maximum(z2, 0.0)


if __name__ == "__main__":
    # Small shapes consistent with the module: input_size=6, output_size=21 (PREDICT_SIZE).
    B, T, D_IN, HIDDEN, OUT = 4, 8, 6, 32, 21

    key = jax.random.PRNGKey(0)
    kx, kp = jax.random.split(key)
    x = jax.random.normal(kx, (B, T, D_IN), jnp.float32)
    params = init_params(kp, D_IN, HIDDEN, OUT)
    packed = pack_params(params)          # packed once, outside the jitted forward

    fwd = jax.jit(base_model_forward)
    out = jax.block_until_ready(fwd(x, packed))

    ref = reference_forward(x, params)
    assert out.shape == (B, OUT), out.shape
    assert jnp.allclose(out, ref, atol=1e-4, rtol=1e-4), "mismatch vs JAX reference"

    print("KERNEL_OK")
</pallas_src>

<mosaic_0001>
module attributes {stable_mosaic.version = 11 : i64} {
  func.func @kernel(%arg0: memref<32x6xf32, #tpu.memory_space<vmem>>, %arg1: memref<208x128xf32, #tpu.memory_space<vmem>>, %arg2: memref<4x128xf32, #tpu.memory_space<vmem>>) attributes {dimension_semantics = [], scalar_prefetch = 0 : i64, scratch_operands = 0 : i64, tpu.core_type = #tpu.core_type<tc>} {
    %c0 = arith.constant 0 : index
    %c0_0 = arith.constant 0 : index
    %0 = vector.load %arg1[%c0, %c0_0] : memref<208x128xf32, #tpu.memory_space<vmem>>, vector<6x128xf32>
    %c8 = arith.constant 8 : index
    %c0_1 = arith.constant 0 : index
    %1 = vector.load %arg1[%c8, %c0_1] : memref<208x128xf32, #tpu.memory_space<vmem>>, vector<1x128xf32>
    %c9 = arith.constant 9 : index
    %c0_2 = arith.constant 0 : index
    %2 = vector.load %arg1[%c9, %c0_2] : memref<208x128xf32, #tpu.memory_space<vmem>>, vector<1x128xf32>
    %c10 = arith.constant 10 : index
    %c0_3 = arith.constant 0 : index
    %3 = vector.load %arg1[%c10, %c0_3] : memref<208x128xf32, #tpu.memory_space<vmem>>, vector<1x128xf32>
    %c16 = arith.constant 16 : index
    %c0_4 = arith.constant 0 : index
    %4 = vector.load %arg1[%c16, %c0_4] : memref<208x128xf32, #tpu.memory_space<vmem>>, vector<32x128xf32>
    %c48 = arith.constant 48 : index
    %c0_5 = arith.constant 0 : index
    %5 = vector.load %arg1[%c48, %c0_5] : memref<208x128xf32, #tpu.memory_space<vmem>>, vector<32x128xf32>
    %c80 = arith.constant 80 : index
    %c0_6 = arith.constant 0 : index
    %6 = vector.load %arg1[%c80, %c0_6] : memref<208x128xf32, #tpu.memory_space<vmem>>, vector<128x128xf32>
    %c0_7 = arith.constant 0 : index
    %c0_8 = arith.constant 0 : index
    %7 = vector.load %arg0[%c0_7, %c0_8] : memref<32x6xf32, #tpu.memory_space<vmem>>, vector<32x6xf32>
    %cst = arith.constant dense<0.000000e+00> : vector<32x128xf32>
    %8 = tpu.matmul %7, %0, %cst {dimension_numbers = #tpu.dot_dimension_numbers<[1], [0], [0], [1], [0, 0, 1, 1], [], []>} : vector<32x6xf32>, vector<6x128xf32>, vector<32x128xf32> -> vector<32x128xf32>
    %9 = vector.broadcast %1 : vector<1x128xf32> to vector<32x128xf32>
    %10 = arith.addf %8, %9 : vector<32x128xf32>
    %11 = vector.shape_cast %10 : vector<32x128xf32> to vector<4x8x128xf32>
    %cst_9 = arith.constant 0.000000e+00 : f32
    %12 = vector.broadcast %cst_9 : f32 to vector<4x32xf32>
    %cst_10 = arith.constant 0.000000e+00 : f32
    %13 = vector.broadcast %cst_10 : f32 to vector<4x32xf32>
    %14 = vector.extract_strided_slice %11 {offsets = [0, 0, 0], sizes = [4, 1, 128], strides = [1, 1, 1]} : vector<4x8x128xf32> to vector<4x1x128xf32>
    %15 = vector.shape_cast %14 : vector<4x1x128xf32> to vector<4x128xf32>
    %cst_11 = arith.constant dense<0.000000e+00> : vector<4x128xf32>
    %16 = tpu.matmul %12, %4, %cst_11 {dimension_numbers = #tpu.dot_dimension_numbers<[1], [0], [0], [1], [0, 0, 1, 1], [], []>} : vector<4x32xf32>, vector<32x128xf32>, vector<4x128xf32> -> vector<4x128xf32>
    %17 = arith.addf %15, %16 : vector<4x128xf32>
    %18 = arith.negf %17 : vector<4x128xf32>
    %19 = math.exp %18 : vector<4x128xf32>
    %cst_12 = arith.constant 1.000000e+00 : f32
    %20 = vector.broadcast %cst_12 : f32 to vector<4x128xf32>
    %21 = arith.addf %20, %19 : vector<4x128xf32>
    %22 = arith.divf %20, %21 : vector<4x128xf32>
    %23 = vector.extract_strided_slice %22 {offsets = [0, 0], sizes = [4, 32], strides = [1, 1]} : vector<4x128xf32> to vector<4x32xf32>
    %24 = vector.extract_strided_slice %22 {offsets = [0, 32], sizes = [4, 32], strides = [1, 1]} : vector<4x128xf32> to vector<4x32xf32>
    %25 = vector.extract_strided_slice %22 {offsets = [0, 96], sizes = [4, 32], strides = [1, 1]} : vector<4x128xf32> to vector<4x32xf32>
    %26 = vector.extract_strided_slice %17 {offsets = [0, 64], sizes = [4, 32], strides = [1, 1]} : vector<4x128xf32> to vector<4x32xf32>
    %27 = math.tanh %26 : vector<4x32xf32>
    %28 = arith.mulf %24, %13 : vector<4x32xf32>
    %29 = arith.mulf %23, %27 : vector<4x32xf32>
    %30 = arith.addf %28, %29 : vector<4x32xf32>
    %31 = math.tanh %30 : vector<4x32xf32>
    %32 = arith.mulf %25, %31 : vector<4x32xf32>
    %33 = vector.extract_strided_slice %11 {offsets = [0, 1, 0], sizes = [4, 1, 128], strides = [1, 1, 1]} : vector<4x8x128xf32> to vector<4x1x128xf32>
    %34 = vector.shape_cast %33 : vector<4x1x128xf32> to vector<4x128xf32>
    %cst_13 = arith.constant dense<0.000000e+00> : vector<4x128xf32>
    %35 = tpu.matmul %32, %4, %cst_13 {dimension_numbers = #tpu.dot_dimension_numbers<[1], [0], [0], [1], [0, 0, 1, 1], [], []>} : vector<4x32xf32>, vector<32x128xf32>, vector<4x128xf32> -> vector<4x128xf32>
    %36 = arith.addf %34, %35 : vector<4x128xf32>
    %37 = arith.negf %36 : vector<4x128xf32>
    %38 = math.exp %37 : vector<4x128xf32>
    %cst_14 = arith.constant 1.000000e+00 : f32
    %39 = vector.broadcast %cst_14 : f32 to vector<4x128xf32>
    %40 = arith.addf %39, %38 : vector<4x128xf32>
    %41 = arith.divf %39, %40 : vector<4x128xf32>
    %42 = vector.extract_strided_slice %41 {offsets = [0, 0], sizes = [4, 32], strides = [1, 1]} : vector<4x128xf32> to vector<4x32xf32>
    %43 = vector.extract_strided_slice %41 {offsets = [0, 32], sizes = [4, 32], strides = [1, 1]} : vector<4x128xf32> to vector<4x32xf32>
    %44 = vector.extract_strided_slice %41 {offsets = [0, 96], sizes = [4, 32], strides = [1, 1]} : vector<4x128xf32> to vector<4x32xf32>
    %45 = vector.extract_strided_slice %36 {offsets = [0, 64], sizes = [4, 32], strides = [1, 1]} : vector<4x128xf32> to vector<4x32xf32>
    %46 = math.tanh %45 : vector<4x32xf32>
    %47 = arith.mulf %43, %30 : vector<4x32xf32>
    %48 = arith.mulf %42, %46 : vector<4x32xf32>
    %49 = arith.addf %47, %48 : vector<4x32xf32>
    %50 = math.tanh %49 : vector<4x32xf32>
    %51 = arith.mulf %44, %50 : vector<4x32xf32>
    %52 = vector.extract_strided_slice %11 {offsets = [0, 2, 0], sizes = [4, 1, 128], strides = [1, 1, 1]} : vector<4x8x128xf32> to vector<4x1x128xf32>
    %53 = vector.shape_cast %52 : vector<4x1x128xf32> to vector<4x128xf32>
    %cst_15 = arith.constant dense<0.000000e+00> : vector<4x128xf32>
    %54 = tpu.matmul %51, %4, %cst_15 {dimension_numbers = #tpu.dot_dimension_numbers<[1], [0], [0], [1], [0, 0, 1, 1], [], []>} : vector<4x32xf32>, vector<32x128xf32>, vector<4x128xf32> -> vector<4x128xf32>
    %55 = arith.addf %53, %54 : vector<4x128xf32>
    %56 = arith.negf %55 : vector<4x128xf32>
    %57 = math.exp %56 : vector<4x128xf32>
    %cst_16 = arith.constant 1.000000e+00 : f32
    %58 = vector.broadcast %cst_16 : f32 to vector<4x128xf32>
    %59 = arith.addf %58, %57 : vector<4x128xf32>
    %60 = arith.divf %58, %59 : vector<4x128xf32>
    %61 = vector.extract_strided_slice %60 {offsets = [0, 0], sizes = [4, 32], strides = [1, 1]} : vector<4x128xf32> to vector<4x32xf32>
    %62 = vector.extract_strided_slice %60 {offsets = [0, 32], sizes = [4, 32], strides = [1, 1]} : vector<4x128xf32> to vector<4x32xf32>
    %63 = vector.extract_strided_slice %60 {offsets = [0, 96], sizes = [4, 32], strides = [1, 1]} : vector<4x128xf32> to vector<4x32xf32>
    %64 = vector.extract_strided_slice %55 {offsets = [0, 64], sizes = [4, 32], strides = [1, 1]} : vector<4x128xf32> to vector<4x32xf32>
    %65 = math.tanh %64 : vector<4x32xf32>
    %66 = arith.mulf %62, %49 : vector<4x32xf32>
    %67 = arith.mulf %61, %65 : vector<4x32xf32>
    %68 = arith.addf %66, %67 : vector<4x32xf32>
    %69 = math.tanh %68 : vector<4x32xf32>
    %70 = arith.mulf %63, %69 : vector<4x32xf32>
    %71 = vector.extract_strided_slice %11 {offsets = [0, 3, 0], sizes = [4, 1, 128], strides = [1, 1, 1]} : vector<4x8x128xf32> to vector<4x1x128xf32>
    %72 = vector.shape_cast %71 : vector<4x1x128xf32> to vector<4x128xf32>
    %cst_17 = arith.constant dense<0.000000e+00> : vector<4x128xf32>
    %73 = tpu.matmul %70, %4, %cst_17 {dimension_numbers = #tpu.dot_dimension_numbers<[1], [0], [0], [1], [0, 0, 1, 1], [], []>} : vector<4x32xf32>, vector<32x128xf32>, vector<4x128xf32> -> vector<4x128xf32>
    %74 = arith.addf %72, %73 : vector<4x128xf32>
    %75 = arith.negf %74 : vector<4x128xf32>
    %76 = math.exp %75 : vector<4x128xf32>
    %cst_18 = arith.constant 1.000000e+00 : f32
    %77 = vector.broadcast %cst_18 : f32 to vector<4x128xf32>
    %78 = arith.addf %77, %76 : vector<4x128xf32>
    %79 = arith.divf %77, %78 : vector<4x128xf32>
    %80 = vector.extract_strided_slice %79 {offsets = [0, 0], sizes = [4, 32], strides = [1, 1]} : vector<4x128xf32> to vector<4x32xf32>
    %81 = vector.extract_strided_slice %79 {offsets = [0, 32], sizes = [4, 32], strides = [1, 1]} : vector<4x128xf32> to vector<4x32xf32>
    %82 = vector.extract_strided_slice %79 {offsets = [0, 96], sizes = [4, 32], strides = [1, 1]} : vector<4x128xf32> to vector<4x32xf32>
    %83 = vector.extract_strided_slice %74 {offsets = [0, 64], sizes = [4, 32], strides = [1, 1]} : vector<4x128xf32> to vector<4x32xf32>
    %84 = math.tanh %83 : vector<4x32xf32>
    %85 = arith.mulf %81, %68 : vector<4x32xf32>
    %86 = arith.mulf %80, %84 : vector<4x32xf32>
    %87 = arith.addf %85, %86 : vector<4x32xf32>
    %88 = math.tanh %87 : vector<4x32xf32>
    %89 = arith.mulf %82, %88 : vector<4x32xf32>
    %90 = vector.extract_strided_slice %11 {offsets = [0, 4, 0], sizes = [4, 1, 128], strides = [1, 1, 1]} : vector<4x8x128xf32> to vector<4x1x128xf32>
    %91 = vector.shape_cast %90 : vector<4x1x128xf32> to vector<4x128xf32>
    %cst_19 = arith.constant dense<0.000000e+00> : vector<4x128xf32>
    %92 = tpu.matmul %89, %4, %cst_19 {dimension_numbers = #tpu.dot_dimension_numbers<[1], [0], [0], [1], [0, 0, 1, 1], [], []>} : vector<4x32xf32>, vector<32x128xf32>, vector<4x128xf32> -> vector<4x128xf32>
    %93 = arith.addf %91, %92 : vector<4x128xf32>
    %94 = arith.negf %93 : vector<4x128xf32>
    %95 = math.exp %94 : vector<4x128xf32>
    %cst_20 = arith.constant 1.000000e+00 : f32
    %96 = vector.broadcast %cst_20 : f32 to vector<4x128xf32>
    %97 = arith.addf %96, %95 : vector<4x128xf32>
    %98 = arith.divf %96, %97 : vector<4x128xf32>
    %99 = vector.extract_strided_slice %98 {offsets = [0, 0], sizes = [4, 32], strides = [1, 1]} : vector<4x128xf32> to vector<4x32xf32>
    %100 = vector.extract_strided_slice %98 {offsets = [0, 32], sizes = [4, 32], strides = [1, 1]} : vector<4x128xf32> to vector<4x32xf32>
    %101 = vector.extract_strided_slice %98 {offsets = [0, 96], sizes = [4, 32], strides = [1, 1]} : vector<4x128xf32> to vector<4x32xf32>
    %102 = vector.extract_strided_slice %93 {offsets = [0, 64], sizes = [4, 32], strides = [1, 1]} : vector<4x128xf32> to vector<4x32xf32>
    %103 = math.tanh %102 : vector<4x32xf32>
    %104 = arith.mulf %100, %87 : vector<4x32xf32>
    %105 = arith.mulf %99, %103 : vector<4x32xf32>
    %106 = arith.addf %104, %105 : vector<4x32xf32>
    %107 = math.tanh %106 : vector<4x32xf32>
    %108 = arith.mulf %101, %107 : vector<4x32xf32>
    %109 = vector.extract_strided_slice %11 {offsets = [0, 5, 0], sizes = [4, 1, 128], strides = [1, 1, 1]} : vector<4x8x128xf32> to vector<4x1x128xf32>
    %110 = vector.shape_cast %109 : vector<4x1x128xf32> to vector<4x128xf32>
    %cst_21 = arith.constant dense<0.000000e+00> : vector<4x128xf32>
    %111 = tpu.matmul %108, %4, %cst_21 {dimension_numbers = #tpu.dot_dimension_numbers<[1], [0], [0], [1], [0, 0, 1, 1], [], []>} : vector<4x32xf32>, vector<32x128xf32>, vector<4x128xf32> -> vector<4x128xf32>
    %112 = arith.addf %110, %111 : vector<4x128xf32>
    %113 = arith.negf %112 : vector<4x128xf32>
    %114 = math.exp %113 : vector<4x128xf32>
    %cst_22 = arith.constant 1.000000e+00 : f32
    %115 = vector.broadcast %cst_22 : f32 to vector<4x128xf32>
    %116 = arith.addf %115, %114 : vector<4x128xf32>
    %117 = arith.divf %115, %116 : vector<4x128xf32>
    %118 = vector.extract_strided_slice %117 {offsets = [0, 0], sizes = [4, 32], strides = [1, 1]} : vector<4x128xf32> to vector<4x32xf32>
    %119 = vector.extract_strided_slice %117 {offsets = [0, 32], sizes = [4, 32], strides = [1, 1]} : vector<4x128xf32> to vector<4x32xf32>
    %120 = vector.extract_strided_slice %117 {offsets = [0, 96], sizes = [4, 32], strides = [1, 1]} : vector<4x128xf32> to vector<4x32xf32>
    %121 = vector.extract_strided_slice %112 {offsets = [0, 64], sizes = [4, 32], strides = [1, 1]} : vector<4x128xf32> to vector<4x32xf32>
    %122 = math.tanh %121 : vector<4x32xf32>
    %123 = arith.mulf %119, %106 : vector<4x32xf32>
    %124 = arith.mulf %118, %122 : vector<4x32xf32>
    %125 = arith.addf %123, %124 : vector<4x32xf32>
    %126 = math.tanh %125 : vector<4x32xf32>
    %127 = arith.mulf %120, %126 : vector<4x32xf32>
    %128 = vector.extract_strided_slice %11 {offsets = [0, 6, 0], sizes = [4, 1, 128], strides = [1, 1, 1]} : vector<4x8x128xf32> to vector<4x1x128xf32>
    %129 = vector.shape_cast %128 : vector<4x1x128xf32> to vector<4x128xf32>
    %cst_23 = arith.constant dense<0.000000e+00> : vector<4x128xf32>
    %130 = tpu.matmul %127, %4, %cst_23 {dimension_numbers = #tpu.dot_dimension_numbers<[1], [0], [0], [1], [0, 0, 1, 1], [], []>} : vector<4x32xf32>, vector<32x128xf32>, vector<4x128xf32> -> vector<4x128xf32>
    %131 = arith.addf %129, %130 : vector<4x128xf32>
    %132 = arith.negf %131 : vector<4x128xf32>
    %133 = math.exp %132 : vector<4x128xf32>
    %cst_24 = arith.constant 1.000000e+00 : f32
    %134 = vector.broadcast %cst_24 : f32 to vector<4x128xf32>
    %135 = arith.addf %134, %133 : vector<4x128xf32>
    %136 = arith.divf %134, %135 : vector<4x128xf32>
    %137 = vector.extract_strided_slice %136 {offsets = [0, 0], sizes = [4, 32], strides = [1, 1]} : vector<4x128xf32> to vector<4x32xf32>
    %138 = vector.extract_strided_slice %136 {offsets = [0, 32], sizes = [4, 32], strides = [1, 1]} : vector<4x128xf32> to vector<4x32xf32>
    %139 = vector.extract_strided_slice %136 {offsets = [0, 96], sizes = [4, 32], strides = [1, 1]} : vector<4x128xf32> to vector<4x32xf32>
    %140 = vector.extract_strided_slice %131 {offsets = [0, 64], sizes = [4, 32], strides = [1, 1]} : vector<4x128xf32> to vector<4x32xf32>
    %141 = math.tanh %140 : vector<4x32xf32>
    %142 = arith.mulf %138, %125 : vector<4x32xf32>
    %143 = arith.mulf %137, %141 : vector<4x32xf32>
    %144 = arith.addf %142, %143 : vector<4x32xf32>
    %145 = math.tanh %144 : vector<4x32xf32>
    %146 = arith.mulf %139, %145 : vector<4x32xf32>
    %147 = vector.extract_strided_slice %11 {offsets = [0, 7, 0], sizes = [4, 1, 128], strides = [1, 1, 1]} : vector<4x8x128xf32> to vector<4x1x128xf32>
    %148 = vector.shape_cast %147 : vector<4x1x128xf32> to vector<4x128xf32>
    %cst_25 = arith.constant dense<0.000000e+00> : vector<4x128xf32>
    %149 = tpu.matmul %146, %4, %cst_25 {dimension_numbers = #tpu.dot_dimension_numbers<[1], [0], [0], [1], [0, 0, 1, 1], [], []>} : vector<4x32xf32>, vector<32x128xf32>, vector<4x128xf32> -> vector<4x128xf32>
    %150 = arith.addf %148, %149 : vector<4x128xf32>
    %151 = arith.negf %150 : vector<4x128xf32>
    %152 = math.exp %151 : vector<4x128xf32>
    %cst_26 = arith.constant 1.000000e+00 : f32
    %153 = vector.broadcast %cst_26 : f32 to vector<4x128xf32>
    %154 = arith.addf %153, %152 : vector<4x128xf32>
    %155 = arith.divf %153, %154 : vector<4x128xf32>
    %156 = vector.extract_strided_slice %155 {offsets = [0, 0], sizes = [4, 32], strides = [1, 1]} : vector<4x128xf32> to vector<4x32xf32>
    %157 = vector.extract_strided_slice %155 {offsets = [0, 32], sizes = [4, 32], strides = [1, 1]} : vector<4x128xf32> to vector<4x32xf32>
    %158 = vector.extract_strided_slice %155 {offsets = [0, 96], sizes = [4, 32], strides = [1, 1]} : vector<4x128xf32> to vector<4x32xf32>
    %159 = vector.extract_strided_slice %150 {offsets = [0, 64], sizes = [4, 32], strides = [1, 1]} : vector<4x128xf32> to vector<4x32xf32>
    %160 = math.tanh %159 : vector<4x32xf32>
    %161 = arith.mulf %157, %144 : vector<4x32xf32>
    %162 = arith.mulf %156, %160 : vector<4x32xf32>
    %163 = arith.addf %161, %162 : vector<4x32xf32>
    %164 = math.tanh %163 : vector<4x32xf32>
    %165 = arith.mulf %158, %164 : vector<4x32xf32>
    %cst_27 = arith.constant dense<0.000000e+00> : vector<4x128xf32>
    %166 = tpu.matmul %165, %5, %cst_27 {dimension_numbers = #tpu.dot_dimension_numbers<[1], [0], [0], [1], [0, 0, 1, 1], [], []>} : vector<4x32xf32>, vector<32x128xf32>, vector<4x128xf32> -> vector<4x128xf32>
    %167 = vector.broadcast %2 : vector<1x128xf32> to vector<4x128xf32>
    %168 = arith.addf %166, %167 : vector<4x128xf32>
    %cst_28 = arith.constant 0.000000e+00 : f32
    %169 = vector.broadcast %cst_28 : f32 to vector<4x128xf32>
    %170 = arith.maximumf %168, %169 : vector<4x128xf32>
    %cst_29 = arith.constant dense<0.000000e+00> : vector<4x128xf32>
    %171 = tpu.matmul %170, %6, %cst_29 {dimension_numbers = #tpu.dot_dimension_numbers<[1], [0], [0], [1], [0, 0, 1, 1], [], []>} : vector<4x128xf32>, vector<128x128xf32>, vector<4x128xf32> -> vector<4x128xf32>
    %172 = vector.broadcast %3 : vector<1x128xf32> to vector<4x128xf32>
    %173 = arith.addf %171, %172 : vector<4x128xf32>
    %cst_30 = arith.constant 0.000000e+00 : f32
    %174 = vector.broadcast %cst_30 : f32 to vector<4x128xf32>
    %175 = arith.maximumf %173, %174 : vector<4x128xf32>
    %c0_31 = arith.constant 0 : index
    %c0_32 = arith.constant 0 : index
    %176 = vector.load %arg2[%c0_31, %c0_32] : memref<4x128xf32, #tpu.memory_space<vmem>>, vector<4x128xf32>
    tpu.vector_store %arg2[%c0_31, %c0_32], %175 {strides = array<i32>} : memref<4x128xf32, #tpu.memory_space<vmem>>, vector<4x128xf32>,
    return
  }
}

</mosaic_0001>

<bundles_post_ra>
// kernel: base_model_forward.1
= control target key start
LH: loop header
LB: loop body
LE: loop exit
PB: predicated region body
PF: predicated region fallthrough
CT: control target
= control target key end

     0   :  { %7 = vsyncpa [#allocation3], 0  ;;  %s3042_s0 = inlined_call_operand.vmem [shape: f32[32,6], index: 0, kind: input, shape index: {}]   ;;  %s3043_s1 = inlined_call_operand.hbm [shape: f32[208,128], index: 1, kind: input, shape index: {}]   ;;  %s3044_s2 = inlined_call_operand.hbm [shape: f32[4,128], index: 2, kind: output, shape index: {}]  }
   0x1   :  { %8 = vsyncpa [#allocation4], 0  ;;  %s2613_s9 = smov [#allocation2]   ;;  %s2565_s13 = scalar_lea.hbm %s3043_s1, 3328 }
   0x2   :  { %s16_s10 = sshll.u32 %s2613_s9, 4  ;;  %p2566_p0 = scmp.ne.s32.totalorder %s3043_s1, %s2565_s13  ;;  %s17_s10 = int_to_ptr.vmem [resolvable:$true] %s16_s10 }
   0x3   :  { %p2569_p1 = scmp.lt.u32.totalorder %s2565_s13, %s3043_s1 }
   0x5   :  { %p2571_p2 = pnand %p2569_p1, %p2566_p0 }
   0x7   :  { %2574 = shalt.err (!%p2571_p2)
}
   0x8   :  { %s2575_s18 = scalar_lea.vmem %s17_s10, 3328  ;;  %p2580_p4 = scmp.lt.s32.totalorder %s17_s10, %s17_s10 }
   0x9   :  { %p2576_p3 = scmp.ne.s32.totalorder %s17_s10, %s2575_s18  ;;  %p2581_p5 = scmp.lt.s32.totalorder %s2575_s18, %s2575_s18 }
   0xb   :  { %p2582_p6 = por %p2581_p5, %p2580_p4 }
   0xd   :  { %p2583_p7 = pnand %p2582_p6, %p2576_p3 }
   0xf   :  { %2586 = shalt.err (!%p2583_p7)
}
  0x10   :  { %s2614_s19 = smov 128   ;;  %s2615_s20 = smov 8  }
  0x11   :  { %22 = dma.hbm_to_vmem [thread:$0]  %s3043_s1, 3328, %s17_s10, [#allocation3], %s2614_s19, %s2614_s19, %s2615_s20  }
  0x12   :  { %2609 = dma.done.wait [#allocation3], 3328  }
  0x13   :  { %2610 = vsyncadd [#allocation3], 4294963968  ;;  %v2616_v0 = vmov 0.0|0.0   ;;  %vm2617_vm0 = vmmov 0   ;;  %v2618_v1 = vmov 0.0   ;;  %vm75_vm1 = vcmask 1045504  }
  0x14   :  { %2240 = vmatprep.subr.bf16.mxu0 %v2616_v0  ;;  %2129 = vmatprep.mubr.msk.f32.mxu0 %vm2617_vm0, %v2618_v1  ;;  %vm62_vm2 = vcmask 48128   ;;  %v26_v2 = vld [vmem:[#allocation2] sm:$0x3f]  ;;  %v55_v4 = vld [vmem:[%s3042_s0 + $0x8] sm:$0xff]  ;;  %v30_v5 = vld [vmem:[#allocation2 + $0x10] sm:$0xff]  ;;  %s2620_s30 = smov 32  }
  0x15   :  { %v54_v3 = vld [vmem:[%s3042_s0] sm:$0xff]  ;;  %2080 = vmatprep.subr.msk.mxu1 %vm75_vm1, %v26_v2  ;;  %v31_v6 = vld [vmem:[#allocation2 + $0x18] sm:$0xff]  ;;  %v56_v7 = vld [vmem:[%s3042_s0 + $0x10] sm:$0xff]  ;;  %vm351_vm3 = vcmask 1041409   ;;  %vm354_vm4 = vcmask 1042434   ;;  %vm357_vm5 = vcmask 1043459  }
  0x16   :  { %2082 = vmatprep.mubr.msk.f32.mxu1 %vm62_vm2, %v54_v3  ;;  %2081 = vmatpush3.msk.msra.mxu1 %vm75_vm1, %v26_v2  ;;  %v2662_v8 = vpack.c.bf16 %v31_v6, %v30_v5  ;;  %v32_v9 = vld [vmem:[#allocation2 + $0x20] sm:$0xff]  ;;  %v33_v10 = vld [vmem:[#allocation2 + $0x28] sm:$0xff]  ;;  %v57_v11 = vld [vmem:[%s3042_s0 + $0x18] sm:$0xff]  ;;  %s2619_s0 = smov 64   ;;  %vm164_vm6 = vcmask 261120   ;;  %s2621_s3 = smov [#allocation5]  }
  0x17   :  { %2083 = vmatmul.mubr.msk.f32.vlgmr.msra.gmra.mrb[0].mxu1 %vm62_vm2, %v55_v4  ;;  %2222 = vmatprep.subr.bf16.mxu1 %v2616_v0  ;;  %v2671_v12 = vpack.c.bf16 %v33_v10, %v32_v9  ;;  %v1965_v15 = vld [vmem:[#allocation2 + $0x8] ss:$0 sm:$0xff]  ;;  %s1956_s4 = sshll.u32 %s2621_s3, 4  ;;  %s1957_s4 = int_to_ptr.vmem [resolvable:$true] %s1956_s4 }
  0x18   :  { %2224 = vmatpush3.bf16.msra.mxu1 %v2662_v8  ;;  %2085 = vmatprep.mubr.msk.f32.mxu1 %vm62_vm2, %v56_v7  ;;  %s2587_s5 = scalar_lea.vmem %s1957_s4, 64  ;;  %p2592_p9 = scmp.lt.s32.totalorder %s1957_s4, %s1957_s4 }
  0x19   :  { %2225 = vmatprep.subr.bf16.mxu1 %v2616_v0  ;;  %2242 = vmatpush3.bf16.msra.mxu0 %v2662_v8  ;;  %p2588_p8 = scmp.ne.s32.totalorder %s1957_s4, %s2587_s5  ;;  %p2593_p10 = scmp.lt.s32.totalorder %s2587_s5, %s2587_s5 }
  0x1a   :  { %2243 = vmatprep.subr.bf16.mxu0 %v2616_v0 }
  0x1b   :  { %2086 = vmatmul.mubr.msk.f32.gmra.mrb[2].mxu1 %vm62_vm2, %v57_v11  ;;  %p2594_p11 = por %p2593_p10, %p2592_p9 }
  0x1c   :  { %2227 = vmatpush3.bf16.msra.mxu1 %v2671_v12  ;;  %2096 = vmatprep.mubr.msk.f32.mxu1 %vm2617_vm0, %v2618_v1 }
  0x1d   :  { %2228 = vmatprep.subr.bf16.mxu1 %v2616_v0  ;;  %2245 = vmatpush3.bf16.msra.mxu0 %v2671_v12  ;;  %p2595_p12 = pnand %p2594_p11, %p2588_p8 }
  0x1e   :  { %2252 = vmatprep.subr.bf16.mxu0 %v2616_v0 }
  0x1f   :  { %2097 = vmatmul.mubr.f32.vlgmr.msra.gmra.mrb[4].mxu1 %v2618_v1 }
  0x20   :  { %2230 = vmatpush3.bf16.msra.mxu1 %v2662_v8  ;;  %2107 = vmatprep.mubr.msk.f32.mxu1 %vm2617_vm0, %v2618_v1 }
  0x21   :  { %2231 = vmatprep.subr.bf16.mxu1 %v2616_v0 }
  0x24   :  { %2233 = vmatpush3.bf16.msra.mxu1 %v2671_v12 }
  0x25   :  { %2234 = vmatprep.subr.bf16.mxu1 %v2616_v0 }
  0xea   :  { %v2084_v13 = vpop.f32.mrb[0].mxu1 }
  0xeb   :  { %v145_v14 = vpop.f32.mrb[1].mxu1  ;;  %v2692_v20 = vadd.f32 %v2084_v13, %v1965_v15 }
  0xec   :  { %v2690_v18 = vadd.f32 %v1965_v15, %v145_v14 }
  0xee   :  { %v2087_v16 = vpop.f32.mrb[2].mxu1 }
  0xef   :  { %v155_v17 = vpop.f32.mrb[3].mxu1  ;;  %v2698_v28 = vadd.f32 %v2087_v16, %v1965_v15 }
  0xf0   :  { %v2696_v27 = vadd.f32 %v1965_v15, %v155_v17 }
  0xf2   :  { %v234_v19 = vpop.f32.mrb[4].mxu1 }
  0xf3   :  { %v239_v21 = vrot.slane %v234_v19, 1  ;;  %v246_v22 = vadd.f32 %v234_v19, %v2690_v18  ;;  %v2098_v23 = vpop.f32.mrb[5].mxu1  ;;  %v240_v24 = vrot.slane %v234_v19, 2  ;;  %v241_v25 = vrot.slane %v234_v19, 3 }
  0xf5   :  { %v247_v26 = vadd.f32 %v239_v21, %v2692_v20  ;;  %2309 = vtanh.f32 %v246_v22  ;;  %v248_v29 = vadd.f32 %v240_v24, %v2696_v27  ;;  %v249_v30 = vadd.f32 %v241_v25, %v2698_v28 }
  0xf6   :  { %v1971_v36 = vmul.f32 -1.442695, %v246_v22 }
  0xf7   :  { %2311 = vtanh.f32 %v247_v26  ;;  %v1972_v35 = vmul.f32 -1.442695, %v247_v26  ;;  %v1973_v37 = vmul.f32 -1.442695, %v248_v29  ;;  %v1974_v38 = vmul.f32 -1.442695, %v249_v30 }
  0xf8   :  { %2313 = vtanh.f32 %v248_v29 }
  0xf9   :  { %2315 = vtanh.f32 %v249_v30 }
  0xfa   :  { %2317 = vpow2.f32 %v1972_v35 }
  0xfb   :  { %2319 = vpow2.f32 %v1971_v36 }
  0xfc   :  { %2321 = vpow2.f32 %v1973_v37 }
  0xfd   :  { %2323 = vpow2.f32 %v1974_v38 }
  0xff   :  { %v2310_v31 = vpop.eup %2309 }
 0x100   :  { %286 = vrot.lane.b32.xlu1 %v2310_v31, %s2619_s0 }
 0x101   :  { %v2312_v32 = vpop.eup %2311 }
 0x102   :  { %288 = vrot.lane.b32.xlu0 %v2312_v32, %s2619_s0  ;;  %v2314_v33 = vpop.eup %2313 }
 0x103   :  { %v2316_v34 = vpop.eup %2315 }
 0x104   :  { %292 = vrot.lane.b32.xlu1 %v2316_v34, %s2619_s0  ;;  %v2318_v39 = vpop.eup %2317 }
 0x105   :  { %v2320_v40 = vpop.eup %2319  ;;  %v263_v41 = vadd.f32 1.0, %v2318_v39 }
 0x106   :  { %290 = vrot.lane.b32.xlu0 %v2314_v33, %s2619_s0  ;;  %v2322_v42 = vpop.eup %2321  ;;  %v262_v43 = vadd.f32 1.0, %v2320_v40 }
 0x107   :  { %v264_v44 = vadd.f32 1.0, %v2322_v42  ;;  %2325 = vrcp.f32 %v263_v41  ;;  %v2324_v45 = vpop.eup %2323 }
 0x108   :  { %2327 = vrcp.f32 %v262_v43  ;;  %v265_v46 = vadd.f32 1.0, %v2324_v45 }
 0x109   :  { %2329 = vrcp.f32 %v264_v44 }
 0x10a   :  { %2331 = vrcp.f32 %v265_v46 }
 0x111   :  { %v2326_v47 = vpop.eup %2325 }
 0x112   :  { %v2328_v51 = vpop.eup %2327  ;;  %v279_v59 = vmul.f32 0.0, %v2326_v47 }
 0x113   :  { %v2330_v52 = vpop.eup %2329  ;;  %v278_v63 = vmul.f32 0.0, %v2328_v51 }
 0x114   :  { %v2332_v57 = vpop.eup %2331  ;;  %v280_v62 = vmul.f32 0.0, %v2330_v52 }
 0x115   :  { %v281_v6 = vmul.f32 0.0, %v2332_v57 }
 0x172   :  { %v287_v48 = vpop.permute.xlu1 %286 }
 0x173   :  { %v298_v54 = vmul.f32 %v2328_v51, %v287_v48 }
 0x174   :  { %v289_v49 = vpop.permute.xlu0 %288 }
 0x175   :  { %v299_v50 = vmul.f32 %v2326_v47, %v289_v49 }
 0x176   :  { %v293_v56 = vpop.permute.xlu1 %292 }
 0x177   :  { %308 = vrot.lane.b32.xlu0 %v299_v50, %s2620_s30  ;;  %v301_v58 = vmul.f32 %v2332_v57, %v293_v56 }
 0x178   :  { %v291_v53 = vpop.permute.xlu0 %290 }
 0x179   :  { %v300_v55 = vmul.f32 %v2330_v52, %v291_v53 }
 0x17b   :  { %310 = vrot.lane.b32.xlu1 %v300_v55, %s2620_s30  ;;  %306 = vrot.lane.b32.xlu0 %v298_v54, %s2620_s30 }
 0x17f   :  { %312 = vrot.lane.b32.xlu1 %v301_v58, %s2620_s30 }
 0x1e9   :  { %v309_v60 = vpop.permute.xlu0 %308 }
 0x1ea   :  { %v2710_v61 = vadd.f32 %v309_v60, %v279_v59 }
 0x1ec   :  { %2333 = vtanh.f32 %v2710_v61 }
 0x1ed   :  { %v311_v2 = vpop.permute.xlu1 %310  ;;  %v307_v3 = vpop.permute.xlu0 %306 }
 0x1ee   :  { %v2713_v4 = vadd.f32 %v311_v2, %v280_v62  ;;  %v2715_v5 = vadd.f32 %v307_v3, %v278_v63 }
 0x1f0   :  { %2335 = vtanh.f32 %v2713_v4 }
 0x1f1   :  { %2337 = vtanh.f32 %v2715_v5  ;;  %v313_v7 = vpop.permute.xlu1 %312 }
 0x1f2   :  { %v2719_v9 = vadd.f32 %v313_v7, %v281_v6 }
 0x1f4   :  { %2339 = vtanh.f32 %v2719_v9 }
 0x1f6   :  { %v2334_v10 = vpop.eup %2333 }
 0x1f7   :  { %332 = vrot.lane.b32.xlu0 %v2334_v10, %s2619_s0 }
 0x1fa   :  { %v2336_v11 = vpop.eup %2335 }
 0x1fb   :  { %v2338_v13 = vpop.eup %2337  ;;  %334 = vrot.lane.b32.xlu1 %v2336_v11, %s2619_s0 }
 0x1fc   :  { %330 = vrot.lane.b32.xlu0 %v2338_v13, %s2619_s0 }
 0x1fe   :  { %v2340_v14 = vpop.eup %2339 }
 0x1ff   :  { %336 = vrot.lane.b32.xlu1 %v2340_v14, %s2619_s0 }
 0x269   :  { %v333_v15 = vpop.permute.xlu0 %332 }
 0x26a   :  { %v343_v16 = vmul.f32 %v2326_v47, %v333_v15  ;;  %v477_v15 = vrot.slane %v2715_v5, 7 }
 0x26c   :  { %v350_v23 = vrot.slane %v343_v16, 7 }
 0x26d   :  { %v335_v17 = vpop.permute.xlu1 %334 }
 0x26e   :  { %v344_v19 = vmul.f32 %v2330_v52, %v335_v17  ;;  %v331_v21 = vpop.permute.xlu0 %330 }
 0x26f   :  { %v342_v22 = vmul.f32 %v2328_v51, %v331_v21  ;;  %v479_v21 = vrot.slane %v2713_v4, 7 }
 0x270   :  { %v353_v24 = vrot.slane %v344_v19, 6  ;;  %v478_v19 = vrot.slane %v2710_v61, 7 }
 0x271   :  { %v337_v25 = vpop.permute.xlu1 %336  ;;  %v352_v26 = vsel %vm351_vm3, %v350_v23, %v342_v22 }
 0x272   :  { %v345_v29 = vmul.f32 %v2332_v57, %v337_v25  ;;  %v355_v31 = vsel %vm354_vm4, %v353_v24, %v352_v26 }
 0x274   :  { %v356_v30 = vrot.slane %v345_v29, 5  ;;  %v480_v29 = vrot.slane %v2719_v9, 7 }
 0x276   :  { %v358_v32 = vsel %vm357_vm5, %v356_v30, %v355_v31 }
 0x277   :  { %359 = vrot.lane.b32.xlu0 %v358_v32, %s2620_s30 }
 0x2e9   :  { %v360_v33 = vpop.permute.xlu0 %359 }
 0x2ea   :  { %2108 = vmatmul.mubr.msk.f32.vlgmr.msra.gmra.mrb[6].mxu1 %vm164_vm6, %v360_v33 }
 0x2eb   :  { %2236 = vmatpush3.bf16.msra.mxu1 %v2662_v8  ;;  %2118 = vmatprep.mubr.msk.f32.mxu1 %vm2617_vm0, %v2618_v1 }
 0x2ec   :  { %2237 = vmatprep.subr.bf16.mxu1 %v2616_v0 }
 0x2ef   :  { %2239 = vmatpush3.bf16.msra.mxu1 %v2671_v12 }
 0x2f0   :  { %2246 = vmatprep.subr.bf16.mxu1 %v2616_v0 }
 0x3bd   :  { %v429_v34 = vpop.f32.mrb[6].mxu1 }
 0x3be   :  { %v434_v35 = vrot.slane %v429_v34, 7  ;;  %v2109_v36 = vpop.f32.mrb[7].mxu1  ;;  %v435_v37 = vrot.slane %v429_v34, 1  ;;  %v442_v39 = vadd.f32 %v429_v34, %v2692_v20  ;;  %v436_v40 = vrot.slane %v429_v34, 2 }
 0x3c0   :  { %v441_v38 = vadd.f32 %v434_v35, %v2690_v18  ;;  %v443_v41 = vadd.f32 %v435_v37, %v2696_v27  ;;  %v444_v42 = vadd.f32 %v436_v40, %v2698_v28  ;;  %v1977_v48 = vmul.f32 -1.442695, %v442_v39 }
 0x3c2   :  { %2341 = vtanh.f32 %v441_v38  ;;  %v1976_v47 = vmul.f32 -1.442695, %v441_v38  ;;  %v1978_v49 = vmul.f32 -1.442695, %v443_v41  ;;  %v1979_v50 = vmul.f32 -1.442695, %v444_v42 }
 0x3c3   :  { %2343 = vtanh.f32 %v442_v39 }
 0x3c4   :  { %2345 = vtanh.f32 %v443_v41 }
 0x3c5   :  { %2347 = vtanh.f32 %v444_v42 }
 0x3c6   :  { %2349 = vpow2.f32 %v1976_v47 }
 0x3c7   :  { %2351 = vpow2.f32 %v1977_v48 }
 0x3c8   :  { %2353 = vpow2.f32 %v1978_v49 }
 0x3c9   :  { %2355 = vpow2.f32 %v1979_v50 }
 0x3cc   :  { %v2342_v43 = vpop.eup %2341 }
 0x3cd   :  { %493 = vrot.lane.b32.xlu1 %v2342_v43, %s2619_s0  ;;  %v2344_v44 = vpop.eup %2343 }
 0x3ce   :  { %v2346_v45 = vpop.eup %2345 }
 0x3cf   :  { %497 = vrot.lane.b32.xlu0 %v2346_v45, %s2619_s0  ;;  %v2348_v46 = vpop.eup %2347 }
 0x3d0   :  { %v2350_v51 = vpop.eup %2349 }
 0x3d1   :  { %495 = vrot.lane.b32.xlu1 %v2344_v44, %s2619_s0  ;;  %v2352_v52 = vpop.eup %2351  ;;  %v457_v53 = vadd.f32 1.0, %v2350_v51 }
 0x3d2   :  { %v2354_v54 = vpop.eup %2353  ;;  %v458_v55 = vadd.f32 1.0, %v2352_v52 }
 0x3d3   :  { %499 = vrot.lane.b32.xlu0 %v2348_v46, %s2619_s0  ;;  %v459_v56 = vadd.f32 1.0, %v2354_v54  ;;  %2357 = vrcp.f32 %v457_v53  ;;  %v2356_v57 = vpop.eup %2355 }
 0x3d4   :  { %2359 = vrcp.f32 %v458_v55  ;;  %v460_v58 = vadd.f32 1.0, %v2356_v57 }
 0x3d5   :  { %2361 = vrcp.f32 %v459_v56 }
 0x3d6   :  { %2363 = vrcp.f32 %v460_v58 }
 0x3dd   :  { %v2358_v59 = vpop.eup %2357 }
 0x3de   :  { %v2360_v63 = vpop.eup %2359  ;;  %v485_v16 = vmul.f32 %v2358_v59, %v477_v15 }
 0x3df   :  { %v2362_v2 = vpop.eup %2361  ;;  %v486_v24 = vmul.f32 %v2360_v63, %v478_v19 }
 0x3e0   :  { %v2364_v11 = vpop.eup %2363  ;;  %v487_v23 = vmul.f32 %v2362_v2, %v479_v21 }
 0x3e1   :  { %v488_v5 = vmul.f32 %v2364_v11, %v480_v29 }
 0x43f   :  { %v494_v60 = vpop.permute.xlu1 %493 }
 0x440   :  { %v505_v62 = vmul.f32 %v2358_v59, %v494_v60 }
 0x441   :  { %v498_v3 = vpop.permute.xlu0 %497 }
 0x442   :  { %513 = vrot.lane.b32.xlu1 %v505_v62, %s2620_s30  ;;  %v507_v7 = vmul.f32 %v2362_v2, %v498_v3 }
 0x443   :  { %v496_v6 = vpop.permute.xlu1 %495 }
 0x444   :  { %v506_v10 = vmul.f32 %v2360_v63, %v496_v6  ;;  %517 = vrot.lane.b32.xlu0 %v507_v7, %s2620_s30 }
 0x445   :  { %v500_v13 = vpop.permute.xlu0 %499 }
 0x446   :  { %515 = vrot.lane.b32.xlu1 %v506_v10, %s2620_s30  ;;  %v508_v14 = vmul.f32 %v2364_v11, %v500_v13 }
 0x448   :  { %519 = vrot.lane.b32.xlu0 %v508_v14, %s2620_s30 }
 0x4b4   :  { %v514_v17 = vpop.permute.xlu1 %513 }
 0x4b5   :  { %v2752_v22 = vadd.f32 %v514_v17, %v485_v16 }
 0x4b6   :  { %v518_v25 = vpop.permute.xlu0 %517 }
 0x4b7   :  { %2365 = vtanh.f32 %v2752_v22  ;;  %v2756_v30 = vadd.f32 %v518_v25, %v487_v23 }
 0x4b8   :  { %v516_v26 = vpop.permute.xlu1 %515 }
 0x4b9   :  { %v2758_v31 = vadd.f32 %v516_v26, %v486_v24  ;;  %2367 = vtanh.f32 %v2756_v30 }
 0x4ba   :  { %v520_v61 = vpop.permute.xlu0 %519 }
 0x4bb   :  { %2369 = vtanh.f32 %v2758_v31  ;;  %v2762_v4 = vadd.f32 %v520_v61, %v488_v5 }
 0x4bd   :  { %2371 = vtanh.f32 %v2762_v4 }
 0x4c1   :  { %v2366_v32 = vpop.eup %2365 }
 0x4c2   :  { %537 = vrot.lane.b32.xlu1 %v2366_v32, %s2619_s0 }
 0x4c3   :  { %v2368_v33 = vpop.eup %2367 }
 0x4c4   :  { %541 = vrot.lane.b32.xlu0 %v2368_v33, %s2619_s0 }
 0x4c5   :  { %v2370_v34 = vpop.eup %2369 }
 0x4c6   :  { %539 = vrot.lane.b32.xlu1 %v2370_v34, %s2619_s0 }
 0x4c7   :  { %v2372_v9 = vpop.eup %2371 }
 0x4c8   :  { %543 = vrot.lane.b32.xlu0 %v2372_v9, %s2619_s0 }
 0x534   :  { %v538_v35 = vpop.permute.xlu1 %537 }
 0x535   :  { %v549_v36 = vmul.f32 %v2358_v59, %v538_v35  ;;  %v681_v35 = vrot.slane %v2752_v22, 7 }
 0x536   :  { %v542_v37 = vpop.permute.xlu0 %541 }
 0x537   :  { %v551_v38 = vmul.f32 %v2362_v2, %v542_v37  ;;  %v557_v40 = vrot.slane %v549_v36, 1 }
 0x538   :  { %v540_v39 = vpop.permute.xlu1 %539 }
 0x539   :  { %v550_v41 = vmul.f32 %v2360_v63, %v540_v39  ;;  %v559_v42 = vrot.slane %v551_v38, 7  ;;  %v682_v38 = vrot.slane %v2758_v31, 7 }
 0x53a   :  { %v544_v43 = vpop.permute.xlu0 %543 }
 0x53b   :  { %v558_v44 = vsel %vm351_vm3, %v550_v41, %v557_v40  ;;  %v552_v45 = vmul.f32 %v2364_v11, %v544_v43  ;;  %v684_v40 = vrot.slane %v2762_v4, 7 }
 0x53c   :  { %v560_v46 = vsel %vm354_vm4, %v559_v42, %v558_v44  ;;  %v683_v44 = vrot.slane %v2756_v30, 7 }
 0x53d   :  { %v561_v47 = vrot.slane %v552_v45, 6 }
 0x53f   :  { %v562_v48 = vsel %vm357_vm5, %v561_v47, %v560_v46 }
 0x540   :  { %563 = vrot.lane.b32.xlu1 %v562_v48, %s2620_s30 }
 0x5b2   :  { %v564_v49 = vpop.permute.xlu1 %563 }
 0x5b3   :  { %2119 = vmatmul.mubr.msk.f32.vlgmr.msra.gmra.mrb[8].mxu1 %vm164_vm6, %v564_v49 }
 0x5b4   :  { %2248 = vmatpush3.bf16.msra.mxu1 %v2662_v8  ;;  %2140 = vmatprep.mubr.msk.f32.mxu1 %vm2617_vm0, %v2618_v1 }
 0x5b5   :  { %2249 = vmatprep.subr.bf16.mxu1 %v2616_v0 }
 0x5b8   :  { %2251 = vmatpush3.bf16.msra.mxu1 %v2671_v12 }
 0x5b9   :  { %2258 = vmatprep.subr.bf16.mxu1 %v2616_v0 }
 0x686   :  { %v633_v50 = vpop.f32.mrb[8].mxu1 }
 0x687   :  { %v638_v51 = vrot.slane %v633_v50, 6  ;;  %v2120_v52 = vpop.f32.mrb[9].mxu1  ;;  %v639_v53 = vrot.slane %v633_v50, 7  ;;  %v640_v54 = vrot.slane %v633_v50, 1  ;;  %v647_v58 = vadd.f32 %v633_v50, %v2696_v27 }
 0x689   :  { %v645_v55 = vadd.f32 %v638_v51, %v2690_v18  ;;  %v646_v56 = vadd.f32 %v639_v53, %v2692_v20  ;;  %v648_v57 = vadd.f32 %v640_v54, %v2698_v28  ;;  %v1983_v7 = vmul.f32 -1.442695, %v647_v58 }
 0x68b   :  { %2373 = vtanh.f32 %v645_v55  ;;  %v1981_v2 = vmul.f32 -1.442695, %v645_v55  ;;  %v1982_v3 = vmul.f32 -1.442695, %v646_v56  ;;  %v1984_v6 = vmul.f32 -1.442695, %v648_v57 }
 0x68c   :  { %2375 = vtanh.f32 %v646_v56 }
 0x68d   :  { %2377 = vtanh.f32 %v648_v57 }
 0x68e   :  { %2379 = vtanh.f32 %v647_v58 }
 0x68f   :  { %2381 = vpow2.f32 %v1981_v2 }
 0x690   :  { %2383 = vpow2.f32 %v1982_v3 }
 0x691   :  { %2385 = vpow2.f32 %v1984_v6 }
 0x692   :  { %2387 = vpow2.f32 %v1983_v7 }
 0x695   :  { %v2374_v59 = vpop.eup %2373 }
 0x696   :  { %697 = vrot.lane.b32.xlu0 %v2374_v59, %s2619_s0  ;;  %v2376_v60 = vpop.eup %2375 }
 0x697   :  { %v2378_v62 = vpop.eup %2377  ;;  %699 = vrot.lane.b32.xlu1 %v2376_v60, %s2619_s0 }
 0x698   :  { %v2380_v63 = vpop.eup %2379 }
 0x699   :  { %v2382_v10 = vpop.eup %2381 }
 0x69a   :  { %703 = vrot.lane.b32.xlu0 %v2378_v62, %s2619_s0  ;;  %v661_v11 = vadd.f32 1.0, %v2382_v10  ;;  %v2384_v13 = vpop.eup %2383 }
 0x69b   :  { %701 = vrot.lane.b32.xlu1 %v2380_v63, %s2619_s0  ;;  %v2386_v14 = vpop.eup %2385  ;;  %v662_v15 = vadd.f32 1.0, %v2384_v13 }
 0x69c   :  { %2389 = vrcp.f32 %v661_v11  ;;  %v2388_v16 = vpop.eup %2387  ;;  %v664_v17 = vadd.f32 1.0, %v2386_v14 }
 0x69d   :  { %v663_v19 = vadd.f32 1.0, %v2388_v16  ;;  %2391 = vrcp.f32 %v662_v15 }
 0x69e   :  { %2393 = vrcp.f32 %v664_v17 }
 0x69f   :  { %2395 = vrcp.f32 %v663_v19 }
 0x6a6   :  { %v2390_v21 = vpop.eup %2389 }
 0x6a7   :  { %v2392_v25 = vpop.eup %2391  ;;  %v689_v36 = vmul.f32 %v2390_v21, %v681_v35 }
 0x6a8   :  { %v2394_v29 = vpop.eup %2393  ;;  %v690_v41 = vmul.f32 %v2392_v25, %v682_v38 }
 0x6a9   :  { %v2396_v33 = vpop.eup %2395  ;;  %v692_v43 = vmul.f32 %v2394_v29, %v684_v40 }
 0x6aa   :  { %v691_v22 = vmul.f32 %v2396_v33, %v683_v44 }
 0x708   :  { %v698_v23 = vpop.permute.xlu0 %697 }
 0x709   :  { %v709_v24 = vmul.f32 %v2390_v21, %v698_v23  ;;  %v700_v26 = vpop.permute.xlu1 %699 }
 0x70a   :  { %v710_v5 = vmul.f32 %v2392_v25, %v700_v26 }
 0x70b   :  { %717 = vrot.lane.b32.xlu0 %v709_v24, %s2620_s30 }
 0x70c   :  { %v704_v61 = vpop.permute.xlu0 %703  ;;  %719 = vrot.lane.b32.xlu1 %v710_v5, %s2620_s30 }
 0x70d   :  { %v712_v32 = vmul.f32 %v2394_v29, %v704_v61  ;;  %v702_v34 = vpop.permute.xlu1 %701 }
 0x70e   :  { %v711_v9 = vmul.f32 %v2396_v33, %v702_v34 }
 0x70f   :  { %723 = vrot.lane.b32.xlu0 %v712_v32, %s2620_s30 }
 0x710   :  { %721 = vrot.lane.b32.xlu1 %v711_v9, %s2620_s30 }
 0x77d   :  { %v718_v37 = vpop.permute.xlu0 %717 }
 0x77e   :  { %v2794_v39 = vadd.f32 %v718_v37, %v689_v36  ;;  %v720_v42 = vpop.permute.xlu1 %719 }
 0x77f   :  { %v2799_v45 = vadd.f32 %v720_v42, %v690_v41 }
 0x780   :  { %2397 = vtanh.f32 %v2794_v39 }
 0x781   :  { %v724_v46 = vpop.permute.xlu0 %723  ;;  %2399 = vtanh.f32 %v2799_v45 }
 0x782   :  { %v2801_v47 = vadd.f32 %v724_v46, %v692_v43  ;;  %v722_v31 = vpop.permute.xlu1 %721 }
 0x783   :  { %v2805_v48 = vadd.f32 %v722_v31, %v691_v22 }
 0x784   :  { %2401 = vtanh.f32 %v2801_v47 }
 0x785   :  { %2403 = vtanh.f32 %v2805_v48 }
 0x78a   :  { %v2398_v4 = vpop.eup %2397 }
 0x78b   :  { %741 = vrot.lane.b32.xlu0 %v2398_v4, %s2619_s0  ;;  %v2400_v49 = vpop.eup %2399 }
 0x78c   :  { %743 = vrot.lane.b32.xlu1 %v2400_v49, %s2619_s0 }
 0x78e   :  { %v2402_v30 = vpop.eup %2401 }
 0x78f   :  { %747 = vrot.lane.b32.xlu0 %v2402_v30, %s2619_s0  ;;  %v2404_v50 = vpop.eup %2403 }
 0x790   :  { %745 = vrot.lane.b32.xlu1 %v2404_v50, %s2619_s0 }
 0x7fd   :  { %v742_v51 = vpop.permute.xlu0 %741 }
 0x7fe   :  { %v753_v52 = vmul.f32 %v2390_v21, %v742_v51  ;;  %v744_v53 = vpop.permute.xlu1 %743  ;;  %v885_v51 = vrot.slane %v2794_v39, 7 }
 0x7ff   :  { %v754_v54 = vmul.f32 %v2392_v25, %v744_v53 }
 0x800   :  { %v761_v55 = vrot.slane %v753_v52, 2 }
 0x801   :  { %v748_v56 = vpop.permute.xlu0 %747  ;;  %v762_v58 = vrot.slane %v754_v54, 1  ;;  %v886_v54 = vrot.slane %v2799_v45, 7 }
 0x802   :  { %v756_v57 = vmul.f32 %v2394_v29, %v748_v56  ;;  %v746_v59 = vpop.permute.xlu1 %745  ;;  %v887_v56 = vrot.slane %v2805_v48, 7 }
 0x803   :  { %v763_v62 = vsel %vm351_vm3, %v762_v58, %v761_v55  ;;  %v755_v63 = vmul.f32 %v2396_v33, %v746_v59 }
 0x804   :  { %v765_v60 = vrot.slane %v756_v57, 7 }
 0x805   :  { %v764_v2 = vsel %vm354_vm4, %v755_v63, %v763_v62 }
 0x806   :  { %v766_v3 = vsel %vm357_vm5, %v765_v60, %v764_v2  ;;  %v888_v60 = vrot.slane %v2801_v47, 7 }
 0x807   :  { %767 = vrot.lane.b32.xlu0 %v766_v3, %s2620_s30 }
 0x879   :  { %v768_v6 = vpop.permute.xlu0 %767 }
 0x87a   :  { %2130 = vmatmul.mubr.msk.f32.vlgmr.msra.gmra.mrb[0].mxu0 %vm164_vm6, %v768_v6 }
 0x87b   :  { %2254 = vmatpush3.bf16.msra.mxu0 %v2662_v8  ;;  %2151 = vmatprep.mubr.msk.f32.mxu0 %vm2617_vm0, %v2618_v1 }
 0x87c   :  { %2255 = vmatprep.subr.bf16.mxu0 %v2616_v0 }
 0x87f   :  { %2257 = vmatpush3.bf16.msra.mxu0 %v2671_v12 }
 0x880   :  { %2264 = vmatprep.subr.bf16.mxu0 %v2616_v0 }
 0x94d   :  { %v837_v7 = vpop.f32.mrb[0].mxu0 }
 0x94e   :  { %v842_v10 = vrot.slane %v837_v7, 5  ;;  %v2131_v11 = vpop.f32.mrb[1].mxu0  ;;  %v843_v13 = vrot.slane %v837_v7, 6  ;;  %v844_v14 = vrot.slane %v837_v7, 7  ;;  %v852_v19 = vadd.f32 %v837_v7, %v2698_v28 }
 0x950   :  { %v849_v15 = vadd.f32 %v842_v10, %v2690_v18  ;;  %v850_v16 = vadd.f32 %v843_v13, %v2692_v20  ;;  %v851_v17 = vadd.f32 %v844_v14, %v2696_v27  ;;  %v1989_v61 = vmul.f32 -1.442695, %v852_v19 }
 0x952   :  { %2405 = vtanh.f32 %v849_v15  ;;  %v1986_v26 = vmul.f32 -1.442695, %v849_v15  ;;  %v1987_v29 = vmul.f32 -1.442695, %v850_v16  ;;  %v1988_v5 = vmul.f32 -1.442695, %v851_v17 }
 0x953   :  { %2407 = vtanh.f32 %v850_v16 }
 0x954   :  { %2409 = vtanh.f32 %v851_v17 }
 0x955   :  { %2411 = vtanh.f32 %v852_v19 }
 0x956   :  { %2413 = vpow2.f32 %v1986_v26 }
 0x957   :  { %2415 = vpow2.f32 %v1987_v29 }
 0x958   :  { %2417 = vpow2.f32 %v1988_v5 }
 0x959   :  { %2419 = vpow2.f32 %v1989_v61 }
 0x95c   :  { %v2406_v21 = vpop.eup %2405 }
 0x95d   :  { %901 = vrot.lane.b32.xlu1 %v2406_v21, %s2619_s0  ;;  %v2408_v23 = vpop.eup %2407 }
 0x95e   :  { %v2410_v24 = vpop.eup %2409  ;;  %903 = vrot.lane.b32.xlu0 %v2408_v23, %s2619_s0 }
 0x95f   :  { %v2412_v25 = vpop.eup %2411 }
 0x960   :  { %v2414_v32 = vpop.eup %2413 }
 0x961   :  { %905 = vrot.lane.b32.xlu1 %v2410_v24, %s2619_s0  ;;  %v865_v33 = vadd.f32 1.0, %v2414_v32  ;;  %v2416_v34 = vpop.eup %2415 }
 0x962   :  { %907 = vrot.lane.b32.xlu0 %v2412_v25, %s2619_s0  ;;  %v2418_v9 = vpop.eup %2417  ;;  %v866_v35 = vadd.f32 1.0, %v2416_v34 }
 0x963   :  { %2421 = vrcp.f32 %v865_v33  ;;  %v2420_v36 = vpop.eup %2419  ;;  %v867_v37 = vadd.f32 1.0, %v2418_v9 }
 0x964   :  { %v868_v38 = vadd.f32 1.0, %v2420_v36  ;;  %2423 = vrcp.f32 %v866_v35 }
 0x965   :  { %2425 = vrcp.f32 %v867_v37 }
 0x966   :  { %2427 = vrcp.f32 %v868_v38 }
 0x96d   :  { %v2422_v40 = vpop.eup %2421 }
 0x96e   :  { %v2424_v43 = vpop.eup %2423  ;;  %v893_v52 = vmul.f32 %v2422_v40, %v885_v51 }
 0x96f   :  { %v2426_v46 = vpop.eup %2425  ;;  %v894_v57 = vmul.f32 %v2424_v43, %v886_v54 }
 0x970   :  { %v2428_v49 = vpop.eup %2427  ;;  %v895_v59 = vmul.f32 %v2426_v46, %v887_v56 }
 0x971   :  { %v896_v39 = vmul.f32 %v2428_v49, %v888_v60 }
 0x9cf   :  { %v902_v41 = vpop.permute.xlu1 %901 }
 0x9d0   :  { %v913_v42 = vmul.f32 %v2422_v40, %v902_v41  ;;  %v904_v44 = vpop.permute.xlu0 %903 }
 0x9d1   :  { %v914_v22 = vmul.f32 %v2424_v43, %v904_v44 }
 0x9d2   :  { %921 = vrot.lane.b32.xlu1 %v913_v42, %s2620_s30 }
 0x9d3   :  { %v906_v31 = vpop.permute.xlu1 %905  ;;  %923 = vrot.lane.b32.xlu0 %v914_v22, %s2620_s30 }
 0x9d4   :  { %v915_v4 = vmul.f32 %v2426_v46, %v906_v31  ;;  %v908_v30 = vpop.permute.xlu0 %907 }
 0x9d5   :  { %v916_v50 = vmul.f32 %v2428_v49, %v908_v30 }
 0x9d6   :  { %925 = vrot.lane.b32.xlu1 %v915_v4, %s2620_s30 }
 0x9d7   :  { %927 = vrot.lane.b32.xlu0 %v916_v50, %s2620_s30 }
 0xa44   :  { %v922_v53 = vpop.permute.xlu1 %921 }
 0xa45   :  { %v2837_v55 = vadd.f32 %v922_v53, %v893_v52  ;;  %v924_v58 = vpop.permute.xlu0 %923 }
 0xa46   :  { %v2842_v62 = vadd.f32 %v924_v58, %v894_v57 }
 0xa47   :  { %2429 = vtanh.f32 %v2837_v55 }
 0xa48   :  { %v926_v63 = vpop.permute.xlu1 %925  ;;  %2431 = vtanh.f32 %v2842_v62 }
 0xa49   :  { %v2844_v2 = vadd.f32 %v926_v63, %v895_v59  ;;  %v928_v45 = vpop.permute.xlu0 %927 }
 0xa4a   :  { %v2848_v3 = vadd.f32 %v928_v45, %v896_v39 }
 0xa4b   :  { %2433 = vtanh.f32 %v2844_v2 }
 0xa4c   :  { %2435 = vtanh.f32 %v2848_v3 }
 0xa51   :  { %v2430_v48 = vpop.eup %2429 }
 0xa52   :  { %945 = vrot.lane.b32.xlu1 %v2430_v48, %s2619_s0  ;;  %v2432_v6 = vpop.eup %2431 }
 0xa53   :  { %947 = vrot.lane.b32.xlu0 %v2432_v6, %s2619_s0 }
 0xa55   :  { %v2434_v47 = vpop.eup %2433 }
 0xa56   :  { %949 = vrot.lane.b32.xlu1 %v2434_v47, %s2619_s0  ;;  %v2436_v7 = vpop.eup %2435 }
 0xa57   :  { %951 = vrot.lane.b32.xlu0 %v2436_v7, %s2619_s0 }
 0xac4   :  { %v946_v10 = vpop.permute.xlu1 %945 }
 0xac5   :  { %v957_v11 = vmul.f32 %v2422_v40, %v946_v10  ;;  %v948_v13 = vpop.permute.xlu0 %947 }
 0xac6   :  { %v958_v14 = vmul.f32 %v2424_v43, %v948_v13  ;;  %v1091_v13 = vrot.slane %v2842_v62, 7 }
 0xac7   :  { %v965_v15 = vrot.slane %v957_v11, 3  ;;  %v1090_v11 = vrot.slane %v2837_v55, 7 }
 0xac8   :  { %v950_v16 = vpop.permute.xlu1 %949  ;;  %v966_v19 = vrot.slane %v958_v14, 2 }
 0xac9   :  { %v959_v17 = vmul.f32 %v2426_v46, %v950_v16  ;;  %v952_v21 = vpop.permute.xlu0 %951 }
 0xaca   :  { %v967_v24 = vsel %vm351_vm3, %v966_v19, %v965_v15  ;;  %v960_v25 = vmul.f32 %v2428_v49, %v952_v21 }
 0xacb   :  { %v968_v23 = vrot.slane %v959_v17, 1 }
 0xacd   :  { %v969_v26 = vsel %vm354_vm4, %v968_v23, %v967_v24  ;;  %v1092_v23 = vrot.slane %v2844_v2, 7  ;;  %v1093_v24 = vrot.slane %v2848_v3, 7 }
 0xace   :  { %v970_v29 = vsel %vm357_vm5, %v960_v25, %v969_v26 }
 0xacf   :  { %971 = vrot.lane.b32.xlu1 %v970_v29, %s2620_s30 }
 0xb41   :  { %v972_v5 = vpop.permute.xlu1 %971 }
 0xb42   :  { %2141 = vmatmul.mubr.msk.f32.vlgmr.msra.gmra.mrb[10].mxu1 %vm164_vm6, %v972_v5 }
 0xb43   :  { %2260 = vmatpush3.bf16.msra.mxu1 %v2662_v8  ;;  %2162 = vmatprep.mubr.msk.f32.mxu1 %vm2617_vm0, %v2618_v1 }
 0xb44   :  { %2261 = vmatprep.subr.bf16.mxu1 %v2616_v0 }
 0xb47   :  { %2263 = vmatpush3.bf16.msra.mxu1 %v2671_v12 }
 0xb48   :  { %2270 = vmatprep.subr.bf16.mxu1 %v2616_v0 }
 0xc15   :  { %v1041_v61 = vpop.f32.mrb[10].mxu1 }
 0xc16   :  { %v1046_v32 = vrot.slane %v1041_v61, 4  ;;  %v1047_v33 = vrot.slane %v1041_v61, 5  ;;  %v2142_v34 = vpop.f32.mrb[11].mxu1  ;;  %v1048_v9 = vrot.slane %v1041_v61, 6  ;;  %v1049_v37 = vrot.slane %v1041_v61, 7 }
 0xc18   :  { %v1054_v35 = vadd.f32 %v1046_v32, %v2690_v18  ;;  %v1055_v36 = vadd.f32 %v1047_v33, %v2692_v20  ;;  %v1056_v38 = vadd.f32 %v1048_v9, %v2696_v27  ;;  %v1057_v40 = vadd.f32 %v1049_v37, %v2698_v28 }
 0xc1a   :  { %2437 = vtanh.f32 %v1054_v35  ;;  %v1991_v46 = vmul.f32 -1.442695, %v1054_v35  ;;  %v1992_v22 = vmul.f32 -1.442695, %v1055_v36  ;;  %v1993_v31 = vmul.f32 -1.442695, %v1056_v38 }
 0xc1b   :  { %2439 = vtanh.f32 %v1055_v36  ;;  %v1994_v4 = vmul.f32 -1.442695, %v1057_v40 }
 0xc1c   :  { %2441 = vtanh.f32 %v1056_v38 }
 0xc1d   :  { %2443 = vtanh.f32 %v1057_v40 }
 0xc1e   :  { %2445 = vpow2.f32 %v1991_v46 }
 0xc1f   :  { %2447 = vpow2.f32 %v1992_v22 }
 0xc20   :  { %2449 = vpow2.f32 %v1993_v31 }
 0xc21   :  { %2451 = vpow2.f32 %v1994_v4 }
 0xc24   :  { %v2438_v41 = vpop.eup %2437 }
 0xc25   :  { %v2440_v42 = vpop.eup %2439  ;;  %1106 = vrot.lane.b32.xlu0 %v2438_v41, %s2619_s0 }
 0xc26   :  { %1108 = vrot.lane.b32.xlu1 %v2440_v42, %s2619_s0  ;;  %v2442_v43 = vpop.eup %2441 }
 0xc27   :  { %v2444_v44 = vpop.eup %2443 }
 0xc28   :  { %v2446_v49 = vpop.eup %2445 }
 0xc29   :  { %1110 = vrot.lane.b32.xlu0 %v2442_v43, %s2619_s0  ;;  %v2448_v30 = vpop.eup %2447  ;;  %v1070_v50 = vadd.f32 1.0, %v2446_v49 }
 0xc2a   :  { %1112 = vrot.lane.b32.xlu1 %v2444_v44, %s2619_s0  ;;  %v1071_v51 = vadd.f32 1.0, %v2448_v30  ;;  %v2450_v52 = vpop.eup %2449 }
 0xc2b   :  { %v2452_v53 = vpop.eup %2451  ;;  %2453 = vrcp.f32 %v1070_v50  ;;  %v1072_v54 = vadd.f32 1.0, %v2450_v52 }
 0xc2c   :  { %2455 = vrcp.f32 %v1071_v51  ;;  %v1073_v56 = vadd.f32 1.0, %v2452_v53 }
 0xc2d   :  { %2457 = vrcp.f32 %v1072_v54 }
 0xc2e   :  { %2459 = vrcp.f32 %v1073_v56 }
 0xc35   :  { %v2454_v57 = vpop.eup %2453 }
 0xc36   :  { %v2456_v59 = vpop.eup %2455  ;;  %v1098_v14 = vmul.f32 %v2454_v57, %v1090_v11 }
 0xc37   :  { %v2458_v45 = vpop.eup %2457  ;;  %v1099_v15 = vmul.f32 %v2456_v59, %v1091_v13 }
 0xc38   :  { %v2460_v6 = vpop.eup %2459  ;;  %v1100_v25 = vmul.f32 %v2458_v45, %v1092_v23 }
 0xc39   :  { %v1101_v55 = vmul.f32 %v2460_v6, %v1093_v24 }
 0xc97   :  { %v1107_v58 = vpop.permute.xlu0 %1106 }
 0xc98   :  { %v1109_v60 = vpop.permute.xlu1 %1108  ;;  %v1118_v63 = vmul.f32 %v2454_v57, %v1107_v58 }
 0xc99   :  { %v1119_v39 = vmul.f32 %v2456_v59, %v1109_v60 }
 0xc9a   :  { %1126 = vrot.lane.b32.xlu0 %v1118_v63, %s2620_s30 }
 0xc9b   :  { %1128 = vrot.lane.b32.xlu1 %v1119_v39, %s2620_s30  ;;  %v1111_v48 = vpop.permute.xlu0 %1110 }
 0xc9c   :  { %v1113_v47 = vpop.permute.xlu1 %1112  ;;  %v1120_v7 = vmul.f32 %v2458_v45, %v1111_v48 }
 0xc9d   :  { %v1121_v10 = vmul.f32 %v2460_v6, %v1113_v47 }
 0xc9e   :  { %1130 = vrot.lane.b32.xlu0 %v1120_v7, %s2620_s30 }
 0xc9f   :  { %1132 = vrot.lane.b32.xlu1 %v1121_v10, %s2620_s30 }
 0xd0c   :  { %v1127_v16 = vpop.permute.xlu0 %1126 }
 0xd0d   :  { %v1129_v17 = vpop.permute.xlu1 %1128  ;;  %v2880_v19 = vadd.f32 %v1127_v16, %v1098_v14 }
 0xd0e   :  { %v2882_v21 = vadd.f32 %v1129_v17, %v1099_v15 }
 0xd0f   :  { %2461 = vtanh.f32 %v2880_v19 }
 0xd10   :  { %2463 = vtanh.f32 %v2882_v21  ;;  %v1131_v26 = vpop.permute.xlu0 %1130 }
 0xd11   :  { %v1133_v62 = vpop.permute.xlu1 %1132  ;;  %v2888_v29 = vadd.f32 %v1131_v26, %v1100_v25 }
 0xd12   :  { %v2890_v5 = vadd.f32 %v1133_v62, %v1101_v55 }
 0xd13   :  { %2465 = vtanh.f32 %v2888_v29 }
 0xd14   :  { %2467 = vtanh.f32 %v2890_v5 }
 0xd19   :  { %v2462_v61 = vpop.eup %2461 }
 0xd1a   :  { %v2464_v2 = vpop.eup %2463  ;;  %1150 = vrot.lane.b32.xlu0 %v2462_v61, %s2619_s0 }
 0xd1b   :  { %1152 = vrot.lane.b32.xlu1 %v2464_v2, %s2619_s0 }
 0xd1d   :  { %v2466_v3 = vpop.eup %2465 }
 0xd1e   :  { %v2468_v32 = vpop.eup %2467  ;;  %1154 = vrot.lane.b32.xlu0 %v2466_v3, %s2619_s0 }
 0xd1f   :  { %1156 = vrot.lane.b32.xlu1 %v2468_v32, %s2619_s0 }
 0xd8c   :  { %v1151_v33 = vpop.permute.xlu0 %1150 }
 0xd8d   :  { %v1153_v34 = vpop.permute.xlu1 %1152  ;;  %v1162_v35 = vmul.f32 %v2454_v57, %v1151_v33  ;;  %v1296_v33 = vrot.slane %v2880_v19, 7 }
 0xd8e   :  { %v1163_v9 = vmul.f32 %v2456_v59, %v1153_v34  ;;  %v1297_v34 = vrot.slane %v2882_v21, 7 }
 0xd8f   :  { %v1170_v37 = vrot.slane %v1162_v35, 4 }
 0xd90   :  { %v1171_v36 = vrot.slane %v1163_v9, 3  ;;  %v1155_v38 = vpop.permute.xlu0 %1154 }
 0xd91   :  { %v1157_v40 = vpop.permute.xlu1 %1156  ;;  %v1164_v41 = vmul.f32 %v2458_v45, %v1155_v38 }
 0xd92   :  { %v1165_v42 = vmul.f32 %v2460_v6, %v1157_v40  ;;  %v1172_v44 = vsel %vm351_vm3, %v1171_v36, %v1170_v37 }
 0xd93   :  { %v1173_v43 = vrot.slane %v1164_v41, 2  ;;  %v1298_v41 = vrot.slane %v2888_v29, 7 }
 0xd94   :  { %v1175_v46 = vrot.slane %v1165_v42, 1  ;;  %v1299_v42 = vrot.slane %v2890_v5, 7 }
 0xd95   :  { %v1174_v22 = vsel %vm354_vm4, %v1173_v43, %v1172_v44 }
 0xd96   :  { %v1176_v31 = vsel %vm357_vm5, %v1175_v46, %v1174_v22 }
 0xd97   :  { %1177 = vrot.lane.b32.xlu0 %v1176_v31, %s2620_s30 }
 0xe09   :  { %v1178_v4 = vpop.permute.xlu0 %1177 }
 0xe0a   :  { %2152 = vmatmul.mubr.msk.f32.vlgmr.msra.gmra.mrb[2].mxu0 %vm164_vm6, %v1178_v4 }
 0xe0b   :  { %2266 = vmatpush3.bf16.msra.mxu0 %v2662_v8  ;;  %2173 = vmatprep.mubr.msk.f32.mxu0 %vm2617_vm0, %v2618_v1 }
 0xe0c   :  { %2267 = vmatprep.subr.bf16.mxu0 %v2616_v0 }
 0xe0f   :  { %2269 = vmatpush3.bf16.msra.mxu0 %v2671_v12 }
 0xe10   :  { %2276 = vmatprep.subr.bf16.mxu0 %v2616_v0 }
 0xedd   :  { %v1247_v49 = vpop.f32.mrb[2].mxu0 }
 0xede   :  { %v1252_v30 = vrot.slane %v1247_v49, 3  ;;  %v1253_v50 = vrot.slane %v1247_v49, 4  ;;  %v2153_v51 = vpop.f32.mrb[3].mxu0  ;;  %v1254_v52 = vrot.slane %v1247_v49, 5  ;;  %v1255_v56 = vrot.slane %v1247_v49, 6 }
 0xee0   :  { %v1260_v53 = vadd.f32 %v1252_v30, %v2690_v18  ;;  %v1261_v54 = vadd.f32 %v1253_v50, %v2692_v20  ;;  %v1262_v8 = vadd.f32 %v1254_v52, %v2696_v27  ;;  %v1263_v57 = vadd.f32 %v1255_v56, %v2698_v28 }
 0xee2   :  { %2469 = vtanh.f32 %v1260_v53  ;;  %v1996_v63 = vmul.f32 -1.442695, %v1260_v53  ;;  %v1997_v39 = vmul.f32 -1.442695, %v1261_v54  ;;  %v1998_v45 = vmul.f32 -1.442695, %v1262_v8 }
 0xee3   :  { %2471 = vtanh.f32 %v1261_v54  ;;  %v1999_v48 = vmul.f32 -1.442695, %v1263_v57 }
 0xee4   :  { %2473 = vtanh.f32 %v1262_v8 }
 0xee5   :  { %2475 = vtanh.f32 %v1263_v57 }
 0xee6   :  { %2477 = vpow2.f32 %v1996_v63 }
 0xee7   :  { %2479 = vpow2.f32 %v1997_v39 }
 0xee8   :  { %2481 = vpow2.f32 %v1998_v45 }
 0xee9   :  { %2483 = vpow2.f32 %v1999_v48 }
 0xeec   :  { %v2470_v12 = vpop.eup %2469 }
 0xeed   :  { %v2472_v58 = vpop.eup %2471  ;;  %1312 = vrot.lane.b32.xlu1 %v2470_v12, %s2619_s0 }
 0xeee   :  { %1314 = vrot.lane.b32.xlu0 %v2472_v58, %s2619_s0  ;;  %v2474_v59 = vpop.eup %2473 }
 0xeef   :  { %v2476_v60 = vpop.eup %2475 }
 0xef0   :  { %v2478_v6 = vpop.eup %2477 }
 0xef1   :  { %1316 = vrot.lane.b32.xlu1 %v2474_v59, %s2619_s0  ;;  %v2480_v47 = vpop.eup %2479  ;;  %v1276_v7 = vadd.f32 1.0, %v2478_v6 }
 0xef2   :  { %1318 = vrot.lane.b32.xlu0 %v2476_v60, %s2619_s0  ;;  %v1277_v10 = vadd.f32 1.0, %v2480_v47  ;;  %v2482_v11 = vpop.eup %2481 }
 0xef3   :  { %v2484_v13 = vpop.eup %2483  ;;  %2485 = vrcp.f32 %v1276_v7  ;;  %v1278_v14 = vadd.f32 1.0, %v2482_v11 }
 0xef4   :  { %2487 = vrcp.f32 %v1277_v10  ;;  %v1279_v15 = vadd.f32 1.0, %v2484_v13 }
 0xef5   :  { %2489 = vrcp.f32 %v1278_v14 }
 0xef6   :  { %2491 = vrcp.f32 %v1279_v15 }
 0xefd   :  { %v2486_v16 = vpop.eup %2485 }
 0xefe   :  { %v2488_v23 = vpop.eup %2487  ;;  %v1304_v9 = vmul.f32 %v2486_v16, %v1296_v33 }
 0xeff   :  { %v2490_v26 = vpop.eup %2489  ;;  %v1305_v35 = vmul.f32 %v2488_v23, %v1297_v34 }
 0xf00   :  { %v2492_v61 = vpop.eup %2491  ;;  %v1306_v43 = vmul.f32 %v2490_v26, %v1298_v41 }
 0xf01   :  { %v1307_v19 = vmul.f32 %v2492_v61, %v1299_v42 }
 0xf5f   :  { %v1313_v17 = vpop.permute.xlu1 %1312 }
 0xf60   :  { %v1315_v24 = vpop.permute.xlu0 %1314  ;;  %v1324_v25 = vmul.f32 %v2486_v16, %v1313_v17 }
 0xf61   :  { %v1325_v55 = vmul.f32 %v2488_v23, %v1315_v24 }
 0xf62   :  { %1332 = vrot.lane.b32.xlu1 %v1324_v25, %s2620_s30 }
 0xf63   :  { %1334 = vrot.lane.b32.xlu0 %v1325_v55, %s2620_s30  ;;  %v1317_v62 = vpop.permute.xlu1 %1316 }
 0xf64   :  { %v1319_v2 = vpop.permute.xlu0 %1318  ;;  %v1326_v3 = vmul.f32 %v2490_v26, %v1317_v62 }
 0xf65   :  { %v1327_v32 = vmul.f32 %v2492_v61, %v1319_v2 }
 0xf66   :  { %1336 = vrot.lane.b32.xlu1 %v1326_v3, %s2620_s30 }
 0xf67   :  { %1338 = vrot.lane.b32.xlu0 %v1327_v32, %s2620_s30 }
 0xfd4   :  { %v1333_v36 = vpop.permute.xlu1 %1332 }
 0xfd5   :  { %v1335_v37 = vpop.permute.xlu0 %1334  ;;  %v2923_v38 = vadd.f32 %v1333_v36, %v1304_v9 }
 0xfd6   :  { %v2925_v40 = vadd.f32 %v1335_v37, %v1305_v35 }
 0xfd7   :  { %2493 = vtanh.f32 %v2923_v38 }
 0xfd8   :  { %2495 = vtanh.f32 %v2925_v40  ;;  %v1337_v44 = vpop.permute.xlu1 %1336 }
 0xfd9   :  { %v1339_v21 = vpop.permute.xlu0 %1338  ;;  %v2931_v46 = vadd.f32 %v1337_v44, %v1306_v43 }
 0xfda   :  { %v2933_v22 = vadd.f32 %v1339_v21, %v1307_v19 }
 0xfdb   :  { %2497 = vtanh.f32 %v2931_v46 }
 0xfdc   :  { %2499 = vtanh.f32 %v2933_v22 }
 0xfe1   :  { %v2494_v31 = vpop.eup %2493 }
 0xfe2   :  { %v2496_v29 = vpop.eup %2495  ;;  %1356 = vrot.lane.b32.xlu1 %v2494_v31, %s2619_s0 }
 0xfe3   :  { %1358 = vrot.lane.b32.xlu0 %v2496_v29, %s2619_s0 }
 0xfe5   :  { %v2498_v5 = vpop.eup %2497 }
 0xfe6   :  { %v2500_v4 = vpop.eup %2499  ;;  %1360 = vrot.lane.b32.xlu1 %v2498_v5, %s2619_s0 }
 0xfe7   :  { %1362 = vrot.lane.b32.xlu0 %v2500_v4, %s2619_s0 }
0x1054   :  { %v1357_v49 = vpop.permute.xlu1 %1356 }
0x1055   :  { %v1359_v30 = vpop.permute.xlu0 %1358  ;;  %v1368_v51 = vmul.f32 %v2486_v16, %v1357_v49  ;;  %v1502_v49 = vrot.slane %v2923_v38, 7 }
0x1056   :  { %v1369_v50 = vmul.f32 %v2488_v23, %v1359_v30  ;;  %v1503_v30 = vrot.slane %v2925_v40, 7 }
0x1057   :  { %v1376_v53 = vrot.slane %v1368_v51, 5 }
0x1058   :  { %v1377_v52 = vrot.slane %v1369_v50, 4  ;;  %v1361_v54 = vpop.permute.xlu1 %1360 }
0x1059   :  { %v1363_v56 = vpop.permute.xlu0 %1362  ;;  %v1370_v8 = vmul.f32 %v2490_v26, %v1361_v54 }
0x105a   :  { %v1371_v57 = vmul.f32 %v2492_v61, %v1363_v56  ;;  %v1378_v58 = vsel %vm351_vm3, %v1377_v52, %v1376_v53 }
0x105b   :  { %v1379_v12 = vrot.slane %v1370_v8, 3  ;;  %v1504_v8 = vrot.slane %v2931_v46, 7 }
0x105c   :  { %v1381_v59 = vrot.slane %v1371_v57, 2  ;;  %v1505_v57 = vrot.slane %v2933_v22, 7 }
0x105d   :  { %v1380_v60 = vsel %vm354_vm4, %v1379_v12, %v1378_v58 }
0x105e   :  { %v1382_v63 = vsel %vm357_vm5, %v1381_v59, %v1380_v60 }
0x105f   :  { %1383 = vrot.lane.b32.xlu1 %v1382_v63, %s2620_s30 }
0x10d1   :  { %v1384_v39 = vpop.permute.xlu1 %1383 }
0x10d2   :  { %2163 = vmatmul.mubr.msk.f32.vlgmr.msra.gmra.mrb[12].mxu1 %vm164_vm6, %v1384_v39 }
0x10d3   :  { %2184 = vmatprep.mubr.msk.f32.mxu1 %vm2617_vm0, %v2618_v1 }
0x11a5   :  { %v1453_v45 = vpop.f32.mrb[12].mxu1 }
0x11a6   :  { %v1458_v48 = vrot.slane %v1453_v45, 2  ;;  %v1459_v6 = vrot.slane %v1453_v45, 3  ;;  %v2164_v47 = vpop.f32.mrb[13].mxu1  ;;  %v1460_v7 = vrot.slane %v1453_v45, 4  ;;  %v1461_v13 = vrot.slane %v1453_v45, 5 }
0x11a8   :  { %v1466_v10 = vadd.f32 %v1458_v48, %v2690_v18  ;;  %v1467_v11 = vadd.f32 %v1459_v6, %v2692_v20  ;;  %v1468_v14 = vadd.f32 %v1460_v7, %v2696_v27  ;;  %v1469_v15 = vadd.f32 %v1461_v13, %v2698_v28 }
0x11aa   :  { %2501 = vtanh.f32 %v1466_v10  ;;  %v2001_v25 = vmul.f32 -1.442695, %v1466_v10  ;;  %v2002_v55 = vmul.f32 -1.442695, %v1467_v11  ;;  %v2003_v26 = vmul.f32 -1.442695, %v1468_v14 }
0x11ab   :  { %2503 = vtanh.f32 %v1467_v11  ;;  %v2004_v62 = vmul.f32 -1.442695, %v1469_v15 }
0x11ac   :  { %2505 = vtanh.f32 %v1468_v14 }
0x11ad   :  { %2507 = vtanh.f32 %v1469_v15 }
0x11ae   :  { %2509 = vpow2.f32 %v2001_v25 }
0x11af   :  { %2511 = vpow2.f32 %v2002_v55 }
0x11b0   :  { %2513 = vpow2.f32 %v2003_v26 }
0x11b1   :  { %2515 = vpow2.f32 %v2004_v62 }
0x11b4   :  { %v2502_v16 = vpop.eup %2501 }
0x11b5   :  { %v2504_v17 = vpop.eup %2503  ;;  %1518 = vrot.lane.b32.xlu0 %v2502_v16, %s2619_s0 }
0x11b6   :  { %1520 = vrot.lane.b32.xlu1 %v2504_v17, %s2619_s0  ;;  %v2506_v23 = vpop.eup %2505 }
0x11b7   :  { %v2508_v24 = vpop.eup %2507 }
0x11b8   :  { %v2510_v61 = vpop.eup %2509 }
0x11b9   :  { %1522 = vrot.lane.b32.xlu0 %v2506_v23, %s2619_s0  ;;  %v2512_v2 = vpop.eup %2511  ;;  %v1482_v3 = vadd.f32 1.0, %v2510_v61 }
0x11ba   :  { %1524 = vrot.lane.b32.xlu1 %v2508_v24, %s2619_s0  ;;  %v1483_v32 = vadd.f32 1.0, %v2512_v2  ;;  %v2514_v33 = vpop.eup %2513 }
0x11bb   :  { %v2516_v34 = vpop.eup %2515  ;;  %2517 = vrcp.f32 %v1482_v3  ;;  %v1484_v9 = vadd.f32 1.0, %v2514_v33 }
0x11bc   :  { %2519 = vrcp.f32 %v1483_v32  ;;  %v1485_v35 = vadd.f32 1.0, %v2516_v34 }
0x11bd   :  { %2521 = vrcp.f32 %v1484_v9 }
0x11be   :  { %2523 = vrcp.f32 %v1485_v35 }
0x11c5   :  { %v2518_v36 = vpop.eup %2517 }
0x11c6   :  { %v2520_v41 = vpop.eup %2519  ;;  %v1510_v50 = vmul.f32 %v2518_v36, %v1502_v49 }
0x11c7   :  { %v2522_v44 = vpop.eup %2521  ;;  %v1511_v51 = vmul.f32 %v2520_v41, %v1503_v30 }
0x11c8   :  { %v2524_v31 = vpop.eup %2523  ;;  %v1512_v12 = vmul.f32 %v2522_v44, %v1504_v8 }
0x11c9   :  { %v1513_v38 = vmul.f32 %v2524_v31, %v1505_v57 }
0x1227   :  { %v1519_v37 = vpop.permute.xlu0 %1518 }
0x1228   :  { %v1521_v42 = vpop.permute.xlu1 %1520  ;;  %v1530_v43 = vmul.f32 %v2518_v36, %v1519_v37 }
0x1229   :  { %v1531_v19 = vmul.f32 %v2520_v41, %v1521_v42 }
0x122a   :  { %1538 = vrot.lane.b32.xlu0 %v1530_v43, %s2620_s30 }
0x122b   :  { %1540 = vrot.lane.b32.xlu1 %v1531_v19, %s2620_s30  ;;  %v1523_v21 = vpop.permute.xlu0 %1522 }
0x122c   :  { %v1525_v29 = vpop.permute.xlu1 %1524  ;;  %v1532_v5 = vmul.f32 %v2522_v44, %v1523_v21 }
0x122d   :  { %v1533_v4 = vmul.f32 %v2524_v31, %v1525_v29 }
0x122e   :  { %1542 = vrot.lane.b32.xlu0 %v1532_v5, %s2620_s30 }
0x122f   :  { %1544 = vrot.lane.b32.xlu1 %v1533_v4, %s2620_s30 }
0x129c   :  { %v1539_v52 = vpop.permute.xlu0 %1538 }
0x129d   :  { %v1541_v53 = vpop.permute.xlu1 %1540  ;;  %v2962_v54 = vadd.f32 %v1539_v52, %v1510_v50 }
0x129e   :  { %v2964_v56 = vadd.f32 %v1541_v53, %v1511_v51 }
0x129f   :  { %2525 = vtanh.f32 %v2962_v54 }
0x12a0   :  { %2527 = vtanh.f32 %v2964_v56  ;;  %v1543_v58 = vpop.permute.xlu0 %1542 }
0x12a1   :  { %v1545_v40 = vpop.permute.xlu1 %1544  ;;  %v2970_v59 = vadd.f32 %v1543_v58, %v1512_v12 }
0x12a2   :  { %v2972_v60 = vadd.f32 %v1545_v40, %v1513_v38  ;;  %v1708_v40 = vrot.slane %v2962_v54, 7 }
0x12a3   :  { %2529 = vtanh.f32 %v2970_v59 }
0x12a4   :  { %2531 = vtanh.f32 %v2972_v60 }
0x12a9   :  { %v2526_v63 = vpop.eup %2525 }
0x12aa   :  { %v2528_v46 = vpop.eup %2527  ;;  %1562 = vrot.lane.b32.xlu0 %v2526_v63, %s2619_s0  ;;  %v1709_v63 = vrot.slane %v2964_v56, 7 }
0x12ab   :  { %1564 = vrot.lane.b32.xlu1 %v2528_v46, %s2619_s0 }
0x12ad   :  { %v2530_v22 = vpop.eup %2529 }
0x12ae   :  { %v2532_v39 = vpop.eup %2531  ;;  %1566 = vrot.lane.b32.xlu0 %v2530_v22, %s2619_s0 }
0x12af   :  { %1568 = vrot.lane.b32.xlu1 %v2532_v39, %s2619_s0 }
0x131c   :  { %v1563_v45 = vpop.permute.xlu0 %1562 }
0x131d   :  { %v1565_v48 = vpop.permute.xlu1 %1564  ;;  %v1574_v47 = vmul.f32 %v2518_v36, %v1563_v45 }
0x131e   :  { %v1575_v6 = vmul.f32 %v2520_v41, %v1565_v48 }
0x131f   :  { %v1582_v10 = vrot.slane %v1574_v47, 6  ;;  %v1710_v47 = vrot.slane %v2970_v59, 7 }
0x1320   :  { %v1583_v7 = vrot.slane %v1575_v6, 5  ;;  %v1567_v11 = vpop.permute.xlu0 %1566 }
0x1321   :  { %v1569_v13 = vpop.permute.xlu1 %1568  ;;  %v1576_v14 = vmul.f32 %v2522_v44, %v1567_v11 }
0x1322   :  { %v1577_v15 = vmul.f32 %v2524_v31, %v1569_v13  ;;  %v1584_v17 = vsel %vm351_vm3, %v1583_v7, %v1582_v10  ;;  %v1711_v7 = vrot.slane %v2972_v60, 7  ;;  %v37_v60 = vld [vmem:[#allocation2 + $0x48] sm:$0xff] }
0x1323   :  { %v1585_v16 = vrot.slane %v1576_v14, 4 }
0x1324   :  { %v1587_v23 = vrot.slane %v1577_v15, 3 }
0x1325   :  { %v1586_v24 = vsel %vm354_vm4, %v1585_v16, %v1584_v17  ;;  %v34_v16 = vld [vmem:[#allocation2 + $0x30] sm:$0xff]  ;;  %v35_v17 = vld [vmem:[#allocation2 + $0x38] sm:$0xff] }
0x1326   :  { %v1588_v25 = vsel %vm357_vm5, %v1587_v23, %v1586_v24  ;;  %v36_v23 = vld [vmem:[#allocation2 + $0x40] sm:$0xff]  ;;  %v2271_v59 = vpack.c.bf16 %v35_v17, %v34_v16 }
0x1327   :  { %1589 = vrot.lane.b32.xlu0 %v1588_v25, %s2620_s30  ;;  %v2274_v25 = vpack.c.bf16 %v37_v60, %v36_v23 }
0x1328   :  { %2272 = vmatpush3.bf16.msra.mxu1 %v2271_v59 }
0x1329   :  { %2273 = vmatprep.subr.bf16.mxu1 %v2616_v0 }
0x132c   :  { %2275 = vmatpush3.bf16.msra.mxu1 %v2274_v25 }
0x1399   :  { %v1590_v55 = vpop.permute.xlu0 %1589 }
0x139a   :  { %2174 = vmatmul.mubr.msk.f32.vlgmr.msra.gmra.mrb[4].mxu0 %vm164_vm6, %v1590_v55 }
0x139b   :  { %2219 = vmatprep.mubr.msk.f32.mxu0 %vm2617_vm0, %v2618_v1 }
0x146d   :  { %v1659_v26 = vpop.f32.mrb[4].mxu0 }
0x146e   :  { %v1664_v62 = vrot.slane %v1659_v26, 1  ;;  %v1665_v61 = vrot.slane %v1659_v26, 2  ;;  %v2175_v2 = vpop.f32.mrb[5].mxu0  ;;  %v1666_v3 = vrot.slane %v1659_v26, 3  ;;  %v1667_v34 = vrot.slane %v1659_v26, 4 }
0x146f   :  { %v39_v2 = vld [vmem:[#allocation2 + $0x58] sm:$0xff] }
0x1470   :  { %v1672_v32 = vadd.f32 %v1664_v62, %v2690_v18  ;;  %v1673_v33 = vadd.f32 %v1665_v61, %v2692_v20  ;;  %v1674_v9 = vadd.f32 %v1666_v3, %v2696_v27  ;;  %v1675_v35 = vadd.f32 %v1667_v34, %v2698_v28  ;;  %v38_v61 = vld [vmem:[#allocation2 + $0x50] sm:$0xff]  ;;  %v40_v3 = vld [vmem:[#allocation2 + $0x60] sm:$0xff]  ;;  %v41_v34 = vld [vmem:[#allocation2 + $0x68] sm:$0xff] }
0x1472   :  { %2533 = vtanh.f32 %v1672_v32  ;;  %v2006_v18 = vmul.f32 -1.442695, %v1672_v32  ;;  %v2007_v20 = vmul.f32 -1.442695, %v1673_v33  ;;  %v2008_v27 = vmul.f32 -1.442695, %v1674_v9 }
0x1473   :  { %2535 = vtanh.f32 %v1673_v33  ;;  %v2009_v28 = vmul.f32 -1.442695, %v1675_v35  ;;  %v2277_v33 = vpack.c.bf16 %v39_v2, %v38_v61 }
0x1474   :  { %2537 = vtanh.f32 %v1674_v9 }
0x1475   :  { %2539 = vtanh.f32 %v1675_v35  ;;  %2278 = vmatpush3.bf16.msra.mxu0 %v2277_v33 }
0x1476   :  { %2541 = vpow2.f32 %v2006_v18  ;;  %2279 = vmatprep.subr.bf16.mxu0 %v2616_v0 }
0x1477   :  { %2543 = vpow2.f32 %v2007_v20 }
0x1478   :  { %2545 = vpow2.f32 %v2008_v27 }
0x1479   :  { %2547 = vpow2.f32 %v2009_v28 }
0x147c   :  { %v2534_v36 = vpop.eup %2533 }
0x147d   :  { %v2536_v1 = vpop.eup %2535  ;;  %1724 = vrot.lane.b32.xlu1 %v2534_v36, %s2619_s0  ;;  %v2280_v36 = vpack.c.bf16 %v41_v34, %v40_v3 }
0x147e   :  { %1726 = vrot.lane.b32.xlu0 %v2536_v1, %s2619_s0  ;;  %v2538_v37 = vpop.eup %2537  ;;  %v42_v1 = vld [vmem:[#allocation2 + $0x70] sm:$0xff] }
0x147f   :  { %v2540_v41 = vpop.eup %2539  ;;  %2281 = vmatpush3.bf16.msra.mxu0 %v2280_v36 }
0x1480   :  { %v2542_v42 = vpop.eup %2541  ;;  %2282 = vmatprep.subr.bf16.mxu0 %v2616_v0 }
0x1481   :  { %1728 = vrot.lane.b32.xlu1 %v2538_v37, %s2619_s0  ;;  %v2544_v43 = vpop.eup %2543  ;;  %v1688_v19 = vadd.f32 1.0, %v2542_v42  ;;  %v43_v37 = vld [vmem:[#allocation2 + $0x78] sm:$0xff] }
0x1482   :  { %1730 = vrot.lane.b32.xlu0 %v2540_v41, %s2619_s0  ;;  %v1689_v44 = vadd.f32 1.0, %v2544_v43  ;;  %v2546_v21 = vpop.eup %2545  ;;  %v2283_v42 = vpack.c.bf16 %v43_v37, %v42_v1 }
0x1483   :  { %v2548_v31 = vpop.eup %2547  ;;  %2549 = vrcp.f32 %v1688_v19  ;;  %v1690_v29 = vadd.f32 1.0, %v2546_v21  ;;  %v44_v19 = vld [vmem:[#allocation2 + $0x80] sm:$0xff] }
0x1484   :  { %2551 = vrcp.f32 %v1689_v44  ;;  %v1691_v5 = vadd.f32 1.0, %v2548_v31  ;;  %v45_v44 = vld [vmem:[#allocation2 + $0x88] sm:$0xff]  ;;  %2284 = vmatpush3.bf16.msra.mxu0 %v2283_v42 }
0x1485   :  { %2553 = vrcp.f32 %v1690_v29  ;;  %2285 = vmatprep.subr.bf16.mxu0 %v2616_v0 }
0x1486   :  { %2555 = vrcp.f32 %v1691_v5 }
0x148d   :  { %v2550_v4 = vpop.eup %2549 }
0x148e   :  { %v2552_v30 = vpop.eup %2551  ;;  %v1716_v46 = vmul.f32 %v2550_v4, %v1708_v40  ;;  %v52_v40 = vld [vmem:[#allocation2 + $0xc0] sm:$0xff] }
0x148f   :  { %v2997_v53 = vpop.eup %2553  ;;  %v1717_v22 = vmul.f32 %v2552_v30, %v1709_v63  ;;  %v53_v63 = vld [vmem:[#allocation2 + $0xc8] sm:$0xff] }
0x1490   :  { %v2999_v57 = vpop.eup %2555  ;;  %v1718_v10 = vmul.f32 %v2997_v53, %v1710_v47  ;;  %v2012_v47 = vld [vmem:[#allocation2 + $0xa] ss:$0 sm:$0xff] }
0x1491   :  { %v1719_v11 = vmul.f32 %v2999_v57, %v1711_v7 }
0x14ef   :  { %v1725_v49 = vpop.permute.xlu1 %1724 }
0x14f0   :  { %v1727_v50 = vpop.permute.xlu0 %1726  ;;  %v1736_v51 = vmul.f32 %v2550_v4, %v1725_v49 }
0x14f1   :  { %v1737_v52 = vmul.f32 %v2552_v30, %v1727_v50  ;;  %v47_v50 = vld [vmem:[#allocation2 + $0x98] sm:$0xff] }
0x14f2   :  { %1744 = vrot.lane.b32.xlu1 %v1736_v51, %s2620_s30 }
0x14f3   :  { %1746 = vrot.lane.b32.xlu0 %v1737_v52, %s2620_s30  ;;  %v1729_v8 = vpop.permute.xlu1 %1728  ;;  %v48_v52 = vld [vmem:[#allocation2 + $0xa0] sm:$0xff] }
0x14f4   :  { %v1731_v12 = vpop.permute.xlu0 %1730  ;;  %v1738_v38 = vmul.f32 %v2997_v53, %v1729_v8 }
0x14f5   :  { %v1739_v58 = vmul.f32 %v2999_v57, %v1731_v12  ;;  %v51_v12 = vld [vmem:[#allocation2 + $0xb8] sm:$0xff] }
0x14f6   :  { %1748 = vrot.lane.b32.xlu1 %v1738_v38, %s2620_s30 }
0x14f7   :  { %1750 = vrot.lane.b32.xlu0 %v1739_v58, %s2620_s30 }
0x1564   :  { %v1745_v39 = vpop.permute.xlu1 %1744 }
0x1565   :  { %v1747_v45 = vpop.permute.xlu0 %1746  ;;  %v1756_v48 = vadd.f32 %v1745_v39, %v1716_v46  ;;  %v2298_v46 = vpack.c.bf16 %v53_v63, %v52_v40 }
0x1566   :  { %v1757_v6 = vadd.f32 %v1747_v45, %v1717_v22  ;;  %v2010_v22 = vld [vmem:[#allocation2 + $0x9] ss:$0 sm:$0xff] }
0x1567   :  { %2557 = vtanh.f32 %v1756_v48 }
0x1568   :  { %2559 = vtanh.f32 %v1757_v6  ;;  %v1749_v13 = vpop.permute.xlu1 %1748 }
0x1569   :  { %v1751_v54 = vpop.permute.xlu0 %1750  ;;  %v1758_v14 = vadd.f32 %v1749_v13, %v1718_v10 }
0x156a   :  { %v1759_v56 = vadd.f32 %v1751_v54, %v1719_v11 }
0x156b   :  { %2561 = vtanh.f32 %v1758_v14 }
0x156c   :  { %2563 = vtanh.f32 %v1759_v56 }
0x1571   :  { %v2558_v15 = vpop.eup %2557 }
0x1572   :  { %v2560_v24 = vpop.eup %2559  ;;  %1768 = vrot.lane.b32.xlu1 %v2558_v15, %s2619_s0 }
0x1573   :  { %1770 = vrot.lane.b32.xlu0 %v2560_v24, %s2619_s0 }
0x1575   :  { %v2562_v55 = vpop.eup %2561 }
0x1576   :  { %v2564_v26 = vpop.eup %2563  ;;  %1772 = vrot.lane.b32.xlu1 %v2562_v55, %s2619_s0 }
0x1577   :  { %1774 = vrot.lane.b32.xlu0 %v2564_v26, %s2619_s0 }
0x15e4   :  { %v1769_v62 = vpop.permute.xlu1 %1768 }
0x15e5   :  { %v1771_v32 = vpop.permute.xlu0 %1770  ;;  %v1780_v35 = vmul.f32 %v2550_v4, %v1769_v62  ;;  %v2286_v4 = vpack.c.bf16 %v45_v44, %v44_v19 }
0x15e6   :  { %v1781_v9 = vmul.f32 %v2552_v30, %v1771_v32  ;;  %v46_v30 = vld [vmem:[#allocation2 + $0x90] sm:$0xff] }
0x15e7   :  { %v1792_v18 = vrot.slane %v1780_v35, 7  ;;  %2287 = vmatpush3.bf16.msra.mxu0 %v2286_v4  ;;  %v2289_v51 = vpack.c.bf16 %v47_v50, %v46_v30 }
0x15e8   :  { %v1793_v41 = vrot.slane %v1781_v9, 6  ;;  %v1773_v20 = vpop.permute.xlu1 %1772  ;;  %2288 = vmatprep.subr.bf16.mxu0 %v2616_v0 }
0x15e9   :  { %v1775_v27 = vpop.permute.xlu0 %1774  ;;  %v1782_v28 = vmul.f32 %v2997_v53, %v1773_v20  ;;  %v49_v53 = vld [vmem:[#allocation2 + $0xa8] sm:$0xff] }
0x15ea   :  { %v1783_v43 = vmul.f32 %v2999_v57, %v1775_v27  ;;  %v1794_v31 = vsel %vm351_vm3, %v1793_v41, %v1792_v18  ;;  %v2292_v8 = vpack.c.bf16 %v49_v53, %v48_v52  ;;  %v50_v57 = vld [vmem:[#allocation2 + $0xb0] sm:$0xff] }
0x15eb   :  { %v1795_v21 = vrot.slane %v1782_v28, 5  ;;  %2290 = vmatpush3.bf16.msra.mxu0 %v2289_v51  ;;  %v2295_v38 = vpack.c.bf16 %v51_v12, %v50_v57 }
0x15ec   :  { %v1797_v29 = vrot.slane %v1783_v43, 4  ;;  %2291 = vmatprep.subr.bf16.mxu0 %v2616_v0 }
0x15ed   :  { %v1796_v5 = vsel %vm354_vm4, %v1795_v21, %v1794_v31 }
0x15ee   :  { %v1798_v49 = vsel %vm357_vm5, %v1797_v29, %v1796_v5 }
0x15ef   :  { %1799 = vrot.lane.b32.xlu1 %v1798_v49, %s2620_s30  ;;  %2293 = vmatpush3.bf16.msra.mxu0 %v2292_v8 }
0x15f0   :  { %2294 = vmatprep.subr.bf16.mxu0 %v2616_v0 }
0x15f3   :  { %2296 = vmatpush3.bf16.msra.mxu0 %v2295_v38 }
0x15f4   :  { %2297 = vmatprep.subr.bf16.mxu0 %v2616_v0 }
0x15f7   :  { %2299 = vmatpush3.bf16.msra.mxu0 %v2298_v46 }
0x1661   :  { %v1800_v58 = vpop.permute.xlu1 %1799 }
0x1662   :  { %2185 = vmatmul.mubr.msk.f32.vlgmr.msra.gmra.mrb[14].mxu1 %vm164_vm6, %v1800_v58 }
0x1735   :  { %v1869_v39 = vpop.f32.mrb[14].mxu1 }
0x1736   :  { %v1870_v45 = vadd.f32 %v2010_v22, %v1869_v39  ;;  %v2186_v48 = vpop.f32.mrb[15].mxu1 }
0x1738   :  { %v1873_v6 = vmax.f32 %v1870_v45, 0.0 }
0x173a   :  { %2220 = vmatmul.mubr.f32.vlgmr.msra.gmra.mrb[6].mxu0 %v1873_v6 }
0x180d   :  { %v1944_v7 = vpop.f32.mrb[6].mxu0 }
0x180e   :  { %v1945_v10 = vadd.f32 %v2012_v47, %v1944_v7  ;;  %v2221_v11 = vpop.f32.mrb[7].mxu0 }
0x1810   :  { %v1948_v0 = vmax.f32 %v1945_v10, 0.0 }
0x1812   :  { %1949 = vst [vmem:[#allocation5] sm:$0xf] %v1948_v0 }
0x1813   :  { %2598 = shalt.err (!%p2595_p12)
}
0x1814   :  { %s2599_s8 = scalar_lea.hbm %s3044_s2, 64 }
0x1815   :  { %p2600_p13 = scmp.ne.s32.totalorder %s3044_s2, %s2599_s8  ;;  %p2603_p0 = scmp.lt.u32.totalorder %s2599_s8, %s3044_s2 }
0x1817   :  { %p2605_p1 = pnand %p2603_p0, %p2600_p13 }
0x1819   :  { %2608 = shalt.err (!%p2605_p1)
}
0x181a   :  { %1959 = dma.vmem_to_hbm [thread:$0]  %s1957_s4, 64, %s3044_s2, [#allocation4]  }
0x181b   :  { %2611 = dma.done.wait [#allocation4], 64  }
0x181c   :  { %2612 = vsyncadd [#allocation4], 4294967232 }
0x181d   :  { %1963 = vsyncpa [#allocation3], 1 }
0x181e   :  { %1964 = vsyncpa [#allocation4], 1 }

</bundles_post_ra>
